<compile_context>
chip_gen: v7x
topology: tpu7x:2x2x1
jax: 0.10.0
libtpu: 0.0.40
codegen_flags: <defaults>
</compile_context>

<pallas_src>
import functools

import jax
import jax.numpy as jnp
from jax.experimental import pallas as pl
from jax.experimental.pallas import tpu as pltpu

LAYER_SIZES = [2, 32, 64, 128, 64, 32, 2]
NEG_SLOPE = 0.01  # F.leaky_relu default


def _leaky_relu(x):
    return jnp.where(x > 0, x, NEG_SLOPE * x)


def _net_kernel(x_ref,
                w1_ref, b1_ref, w2_ref, b2_ref, w3_ref, b3_ref,
                w4_ref, b4_ref, w5_ref, b5_ref, w6t_ref, b6_ref,
                o_ref):
    # Feature-major: x_ref is (2, TB), batch on the lane axis.
    x = x_ref[...].astype(jnp.float32)                        # (2, TB)

    # ---- fc1 (K=2): VPU broadcast multiply-adds, not a 2-deep MXU matmul.
    w1 = w1_ref[...]                                          # (32, 2) f32
    h = (w1[:, 0:1] * x[0:1, :]
         + w1[:, 1:2] * x[1:2, :]
         + b1_ref[...])                                       # (32, TB)
    h = _leaky_relu(h)

    # ---- fc2..fc5: MXU matmuls (weights possibly bf16), f32 accumulation.
    def linear(h, w_ref, b_ref):
        w = w_ref[...]                                        # (out, in)
        return jnp.dot(w, h.astype(w.dtype),
                       preferred_element_type=jnp.float32) + b_ref[...]

    h = _leaky_relu(linear(h, w2_ref, b2_ref))                # (64,  TB)
    h = _leaky_relu(linear(h, w3_ref, b3_ref))                # (128, TB)
    h = _leaky_relu(linear(h, w4_ref, b4_ref))                # (64,  TB)
    h = _leaky_relu(linear(h, w5_ref, b5_ref))                # (32,  TB)

    # ---- fc6 (N=2): VPU multiply + sublane reduce (XLU), avoids another
    # underfilled MXU push on the serial dependency chain.
    w6t = w6t_ref[...]                                        # (32, 2) f32 (= W6^T)
    c0 = jnp.sum(w6t[:, 0:1] * h, axis=0, keepdims=True)      # (1, TB)
    c1 = jnp.sum(w6t[:, 1:2] * h, axis=0, keepdims=True)      # (1, TB)
    logits = jnp.concatenate([c0, c1], axis=0) + b6_ref[...]  # (2, TB)

    # sigmoid in f32 (exp + divide land on the otherwise-idle EUP slot)
    o_ref[...] = (1.0 / (1.0 + jnp.exp(-logits))).astype(o_ref.dtype)


def init_params(key):
    """Deterministic PyTorch-style (Kaiming-uniform-ish) init.

    PyTorch layout: W is (out_features, in_features), b is stored (out_features, 1)
    so it broadcasts over the lane (batch) axis in the feature-major kernel.
    """
    params = []
    for fan_in, fan_out in zip(LAYER_SIZES[:-1], LAYER_SIZES[1:]):
        key, kw, kb = jax.random.split(key, 3)
        bound = 1.0 / jnp.sqrt(jnp.float32(fan_in))
        w = jax.random.uniform(kw, (fan_out, fan_in), jnp.float32, -bound, bound)
        b = jax.random.uniform(kb, (fan_out, 1), jnp.float32, -bound, bound)
        params.append((w, b))
    return params


@functools.partial(jax.jit, static_argnames=("batch_tile", "weight_dtype"))
def net_forward(x, params, *, batch_tile=256, weight_dtype=jnp.float32):
    B, f_in = x.shape
    assert f_in == LAYER_SIZES[0]
    f_out = LAYER_SIZES[-1]

    TB = batch_tile
    n_tiles = pl.cdiv(B, TB)
    B_pad = n_tiles * TB

    # Pad batch to a tile multiple and go feature-major: (2, B_pad), batch on lanes.
    xt = jnp.pad(x, ((0, B_pad - B), (0, 0))).T

    flat = []
    last = len(params) - 1
    for idx, (w, b) in enumerate(params):
        if idx == 0:
            flat += [w, b]                       # fc1: f32, VPU path
        elif idx == last:
            flat += [w.T, b]                     # fc6: pass W^T (32, 2), f32, VPU path
        else:
            flat += [w.astype(weight_dtype), b]  # fc2..fc5: MXU, optionally bf16

    x_spec = pl.BlockSpec((LAYER_SIZES[0], TB), lambda i: (0, i))
    # Constant-index full-array blocks: DMA'd once, VMEM-resident across grid steps.
    param_specs = [pl.BlockSpec(p.shape, lambda i: (0, 0)) for p in flat]
    out_spec = pl.BlockSpec((f_out, TB), lambda i: (0, i))

    out_t = pl.pallas_call(
        _net_kernel,
        out_shape=jax.ShapeDtypeStruct((f_out, B_pad), jnp.float32),
        grid=(n_tiles,),
        in_specs=[x_spec] + param_specs,
        out_specs=out_spec,
        compiler_params=pltpu.CompilerParams(
            dimension_semantics=("parallel",)),
    )(xt, *flat)

    return out_t.T[:B]


def net_forward_ref(x, params):
    """Plain-JAX reference (PyTorch semantics) for correctness checking."""
    h = x
    for i, (w, b) in enumerate(params):
        h = h @ w.T + b[:, 0]
        if i < len(params) - 1:
            h = _leaky_relu(h)
    return jax.nn.sigmoid(h)


if __name__ == "__main__":
    key = jax.random.PRNGKey(0)
    key, kx1, kx2 = jax.random.split(key, 3)
    params = init_params(key)

    # Batch large enough to exercise the parallel batch grid (2 tiles of 256).
    B = 512
    x = jax.random.normal(kx1, (B, LAYER_SIZES[0]), jnp.float32)
    ref = net_forward_ref(x, params)

    out = jax.block_until_ready(net_forward(x, params))
    assert out.shape == (B, LAYER_SIZES[-1])
    assert jnp.allclose(out, ref, atol=1e-4, rtol=1e-4), float(jnp.max(jnp.abs(out - ref)))

    # bf16 MXU weights (v6e/v7x fast path), f32 accumulation + f32 elementwise.
    out_bf16 = jax.block_until_ready(net_forward(x, params, weight_dtype=jnp.bfloat16))
    assert jnp.allclose(out_bf16, ref, atol=5e-2, rtol=0), float(jnp.max(jnp.abs(out_bf16 - ref)))

    # Ragged batch (exercises the pad-to-tile path).
    B2 = 100
    x2 = jax.random.normal(kx2, (B2, LAYER_SIZES[0]), jnp.float32)
    out2 = jax.block_until_ready(net_forward(x2, params))
    assert jnp.allclose(out2, net_forward_ref(x2, params), atol=1e-4, rtol=1e-4)

    print("KERNEL_OK")
</pallas_src>

<mosaic_0001>
module attributes {stable_mosaic.version = 11 : i64} {
  func.func @_net_kernel(%arg0: i32, %arg1: memref<2x256xf32, #tpu.memory_space<vmem>>, %arg2: memref<32x2xf32, #tpu.memory_space<vmem>>, %arg3: memref<32x1xf32, #tpu.memory_space<vmem>>, %arg4: memref<64x32xf32, #tpu.memory_space<vmem>>, %arg5: memref<64x1xf32, #tpu.memory_space<vmem>>, %arg6: memref<128x64xf32, #tpu.memory_space<vmem>>, %arg7: memref<128x1xf32, #tpu.memory_space<vmem>>, %arg8: memref<64x128xf32, #tpu.memory_space<vmem>>, %arg9: memref<64x1xf32, #tpu.memory_space<vmem>>, %arg10: memref<32x64xf32, #tpu.memory_space<vmem>>, %arg11: memref<32x1xf32, #tpu.memory_space<vmem>>, %arg12: memref<32x2xf32, #tpu.memory_space<vmem>>, %arg13: memref<2x1xf32, #tpu.memory_space<vmem>>, %arg14: memref<2x256xf32, #tpu.memory_space<vmem>>) attributes {dimension_semantics = [#tpu.dimension_semantics<parallel>], iteration_bounds = array<i64: 2>, scalar_prefetch = 0 : i64, scratch_operands = 0 : i64, tpu.core_type = #tpu.core_type<tc>, window_params = [{transform_indices = @transform_0, window_bounds = array<i64: 2, 256>}, {pipeline_mode = #tpu.pipeline_mode<synchronous>, transform_indices = @transform_1, window_bounds = array<i64: 32, 2>}, {pipeline_mode = #tpu.pipeline_mode<synchronous>, transform_indices = @transform_2, window_bounds = array<i64: 32, 1>}, {pipeline_mode = #tpu.pipeline_mode<synchronous>, transform_indices = @transform_3, window_bounds = array<i64: 64, 32>}, {pipeline_mode = #tpu.pipeline_mode<synchronous>, transform_indices = @transform_4, window_bounds = array<i64: 64, 1>}, {pipeline_mode = #tpu.pipeline_mode<synchronous>, transform_indices = @transform_5, window_bounds = array<i64: 128, 64>}, {pipeline_mode = #tpu.pipeline_mode<synchronous>, transform_indices = @transform_6, window_bounds = array<i64: 128, 1>}, {pipeline_mode = #tpu.pipeline_mode<synchronous>, transform_indices = @transform_7, window_bounds = array<i64: 64, 128>}, {pipeline_mode = #tpu.pipeline_mode<synchronous>, transform_indices = @transform_8, window_bounds = array<i64: 64, 1>}, {pipeline_mode = #tpu.pipeline_mode<synchronous>, transform_indices = @transform_9, window_bounds = array<i64: 32, 64>}, {pipeline_mode = #tpu.pipeline_mode<synchronous>, transform_indices = @transform_10, window_bounds = array<i64: 32, 1>}, {pipeline_mode = #tpu.pipeline_mode<synchronous>, transform_indices = @transform_11, window_bounds = array<i64: 32, 2>}, {pipeline_mode = #tpu.pipeline_mode<synchronous>, transform_indices = @transform_12, window_bounds = array<i64: 2, 1>}, {transform_indices = @transform_13, window_bounds = array<i64: 2, 256>}]} {
    %c0 = arith.constant 0 : index
    %c0_0 = arith.constant 0 : index
    %0 = vector.load %arg1[%c0, %c0_0] : memref<2x256xf32, #tpu.memory_space<vmem>>, vector<2x256xf32>
    %c0_1 = arith.constant 0 : index
    %c0_2 = arith.constant 0 : index
    %1 = vector.load %arg2[%c0_1, %c0_2] : memref<32x2xf32, #tpu.memory_space<vmem>>, vector<32x2xf32>
    %2 = vector.extract_strided_slice %1 {offsets = [0, 0], sizes = [32, 1], strides = [1, 1]} : vector<32x2xf32> to vector<32x1xf32>
    %3 = vector.extract_strided_slice %0 {offsets = [0, 0], sizes = [1, 256], strides = [1, 1]} : vector<2x256xf32> to vector<1x256xf32>
    %4 = vector.broadcast %2 : vector<32x1xf32> to vector<32x256xf32>
    %5 = vector.broadcast %3 : vector<1x256xf32> to vector<32x256xf32>
    %6 = arith.mulf %4, %5 : vector<32x256xf32>
    %7 = vector.extract_strided_slice %1 {offsets = [0, 1], sizes = [32, 1], strides = [1, 1]} : vector<32x2xf32> to vector<32x1xf32>
    %8 = vector.extract_strided_slice %0 {offsets = [1, 0], sizes = [1, 256], strides = [1, 1]} : vector<2x256xf32> to vector<1x256xf32>
    %9 = vector.broadcast %7 : vector<32x1xf32> to vector<32x256xf32>
    %10 = vector.broadcast %8 : vector<1x256xf32> to vector<32x256xf32>
    %11 = arith.mulf %9, %10 : vector<32x256xf32>
    %12 = arith.addf %6, %11 : vector<32x256xf32>
    %c0_3 = arith.constant 0 : index
    %c0_4 = arith.constant 0 : index
    %13 = vector.load %arg3[%c0_3, %c0_4] : memref<32x1xf32, #tpu.memory_space<vmem>>, vector<32x1xf32>
    %14 = vector.broadcast %13 : vector<32x1xf32> to vector<32x256xf32>
    %15 = arith.addf %12, %14 : vector<32x256xf32>
    %cst = arith.constant 0.000000e+00 : f32
    %16 = vector.broadcast %cst : f32 to vector<32x256xf32>
    %17 = arith.cmpf ogt, %15, %16 : vector<32x256xf32>
    %cst_5 = arith.constant 0.00999999977 : f32
    %18 = vector.broadcast %cst_5 : f32 to vector<32x256xf32>
    %19 = arith.mulf %18, %15 : vector<32x256xf32>
    %20 = arith.select %17, %15, %19 : vector<32x256xi1>, vector<32x256xf32>
    %c0_6 = arith.constant 0 : index
    %c0_7 = arith.constant 0 : index
    %21 = vector.load %arg4[%c0_6, %c0_7] : memref<64x32xf32, #tpu.memory_space<vmem>>, vector<64x32xf32>
    %cst_8 = arith.constant dense<0.000000e+00> : vector<64x256xf32>
    %22 = tpu.matmul %21, %20, %cst_8 {dimension_numbers = #tpu.dot_dimension_numbers<[1], [0], [0], [1], [0, 0, 1, 1], [], []>} : vector<64x32xf32>, vector<32x256xf32>, vector<64x256xf32> -> vector<64x256xf32>
    %c0_9 = arith.constant 0 : index
    %c0_10 = arith.constant 0 : index
    %23 = vector.load %arg5[%c0_9, %c0_10] : memref<64x1xf32, #tpu.memory_space<vmem>>, vector<64x1xf32>
    %24 = vector.broadcast %23 : vector<64x1xf32> to vector<64x256xf32>
    %25 = arith.addf %22, %24 : vector<64x256xf32>
    %cst_11 = arith.constant 0.000000e+00 : f32
    %26 = vector.broadcast %cst_11 : f32 to vector<64x256xf32>
    %27 = arith.cmpf ogt, %25, %26 : vector<64x256xf32>
    %cst_12 = arith.constant 0.00999999977 : f32
    %28 = vector.broadcast %cst_12 : f32 to vector<64x256xf32>
    %29 = arith.mulf %28, %25 : vector<64x256xf32>
    %30 = arith.select %27, %25, %29 : vector<64x256xi1>, vector<64x256xf32>
    %c0_13 = arith.constant 0 : index
    %c0_14 = arith.constant 0 : index
    %31 = vector.load %arg6[%c0_13, %c0_14] : memref<128x64xf32, #tpu.memory_space<vmem>>, vector<128x64xf32>
    %cst_15 = arith.constant dense<0.000000e+00> : vector<128x256xf32>
    %32 = tpu.matmul %31, %30, %cst_15 {dimension_numbers = #tpu.dot_dimension_numbers<[1], [0], [0], [1], [0, 0, 1, 1], [], []>} : vector<128x64xf32>, vector<64x256xf32>, vector<128x256xf32> -> vector<128x256xf32>
    %c0_16 = arith.constant 0 : index
    %c0_17 = arith.constant 0 : index
    %33 = vector.load %arg7[%c0_16, %c0_17] : memref<128x1xf32, #tpu.memory_space<vmem>>, vector<128x1xf32>
    %34 = vector.broadcast %33 : vector<128x1xf32> to vector<128x256xf32>
    %35 = arith.addf %32, %34 : vector<128x256xf32>
    %cst_18 = arith.constant 0.000000e+00 : f32
    %36 = vector.broadcast %cst_18 : f32 to vector<128x256xf32>
    %37 = arith.cmpf ogt, %35, %36 : vector<128x256xf32>
    %cst_19 = arith.constant 0.00999999977 : f32
    %38 = vector.broadcast %cst_19 : f32 to vector<128x256xf32>
    %39 = arith.mulf %38, %35 : vector<128x256xf32>
    %40 = arith.select %37, %35, %39 : vector<128x256xi1>, vector<128x256xf32>
    %c0_20 = arith.constant 0 : index
    %c0_21 = arith.constant 0 : index
    %41 = vector.load %arg8[%c0_20, %c0_21] : memref<64x128xf32, #tpu.memory_space<vmem>>, vector<64x128xf32>
    %cst_22 = arith.constant dense<0.000000e+00> : vector<64x256xf32>
    %42 = tpu.matmul %41, %40, %cst_22 {dimension_numbers = #tpu.dot_dimension_numbers<[1], [0], [0], [1], [0, 0, 1, 1], [], []>} : vector<64x128xf32>, vector<128x256xf32>, vector<64x256xf32> -> vector<64x256xf32>
    %c0_23 = arith.constant 0 : index
    %c0_24 = arith.constant 0 : index
    %43 = vector.load %arg9[%c0_23, %c0_24] : memref<64x1xf32, #tpu.memory_space<vmem>>, vector<64x1xf32>
    %44 = vector.broadcast %43 : vector<64x1xf32> to vector<64x256xf32>
    %45 = arith.addf %42, %44 : vector<64x256xf32>
    %cst_25 = arith.constant 0.000000e+00 : f32
    %46 = vector.broadcast %cst_25 : f32 to vector<64x256xf32>
    %47 = arith.cmpf ogt, %45, %46 : vector<64x256xf32>
    %cst_26 = arith.constant 0.00999999977 : f32
    %48 = vector.broadcast %cst_26 : f32 to vector<64x256xf32>
    %49 = arith.mulf %48, %45 : vector<64x256xf32>
    %50 = arith.select %47, %45, %49 : vector<64x256xi1>, vector<64x256xf32>
    %c0_27 = arith.constant 0 : index
    %c0_28 = arith.constant 0 : index
    %51 = vector.load %arg10[%c0_27, %c0_28] : memref<32x64xf32, #tpu.memory_space<vmem>>, vector<32x64xf32>
    %cst_29 = arith.constant dense<0.000000e+00> : vector<32x256xf32>
    %52 = tpu.matmul %51, %50, %cst_29 {dimension_numbers = #tpu.dot_dimension_numbers<[1], [0], [0], [1], [0, 0, 1, 1], [], []>} : vector<32x64xf32>, vector<64x256xf32>, vector<32x256xf32> -> vector<32x256xf32>
    %c0_30 = arith.constant 0 : index
    %c0_31 = arith.constant 0 : index
    %53 = vector.load %arg11[%c0_30, %c0_31] : memref<32x1xf32, #tpu.memory_space<vmem>>, vector<32x1xf32>
    %54 = vector.broadcast %53 : vector<32x1xf32> to vector<32x256xf32>
    %55 = arith.addf %52, %54 : vector<32x256xf32>
    %cst_32 = arith.constant 0.000000e+00 : f32
    %56 = vector.broadcast %cst_32 : f32 to vector<32x256xf32>
    %57 = arith.cmpf ogt, %55, %56 : vector<32x256xf32>
    %cst_33 = arith.constant 0.00999999977 : f32
    %58 = vector.broadcast %cst_33 : f32 to vector<32x256xf32>
    %59 = arith.mulf %58, %55 : vector<32x256xf32>
    %60 = arith.select %57, %55, %59 : vector<32x256xi1>, vector<32x256xf32>
    %c0_34 = arith.constant 0 : index
    %c0_35 = arith.constant 0 : index
    %61 = vector.load %arg12[%c0_34, %c0_35] : memref<32x2xf32, #tpu.memory_space<vmem>>, vector<32x2xf32>
    %62 = vector.extract_strided_slice %61 {offsets = [0, 0], sizes = [32, 1], strides = [1, 1]} : vector<32x2xf32> to vector<32x1xf32>
    %63 = vector.broadcast %62 : vector<32x1xf32> to vector<32x256xf32>
    %64 = arith.mulf %63, %60 : vector<32x256xf32>
    %cst_36 = arith.constant dense<0.000000e+00> : vector<256xf32>
    %65 = vector.multi_reduction <add>, %64, %cst_36 [0] : vector<32x256xf32> to vector<256xf32>
    %66 = vector.shape_cast %65 : vector<256xf32> to vector<1x256xf32>
    %67 = vector.extract_strided_slice %61 {offsets = [0, 1], sizes = [32, 1], strides = [1, 1]} : vector<32x2xf32> to vector<32x1xf32>
    %68 = vector.broadcast %67 : vector<32x1xf32> to vector<32x256xf32>
    %69 = arith.mulf %68, %60 : vector<32x256xf32>
    %cst_37 = arith.constant dense<0.000000e+00> : vector<256xf32>
    %70 = vector.multi_reduction <add>, %69, %cst_37 [0] : vector<32x256xf32> to vector<256xf32>
    %71 = vector.shape_cast %70 : vector<256xf32> to vector<1x256xf32>
    %72 = tpu.concatenate %66, %71 in 0 : vector<1x256xf32>, vector<1x256xf32> -> vector<2x256xf32>
    %c0_38 = arith.constant 0 : index
    %c0_39 = arith.constant 0 : index
    %73 = vector.load %arg13[%c0_38, %c0_39] : memref<2x1xf32, #tpu.memory_space<vmem>>, vector<2x1xf32>
    %74 = vector.broadcast %73 : vector<2x1xf32> to vector<2x256xf32>
    %75 = arith.addf %72, %74 : vector<2x256xf32>
    %cst_40 = arith.constant 0.000000e+00 : f32
    %76 = vector.broadcast %cst_40 : f32 to vector<2x256xf32>
    %77 = arith.subf %76, %75 : vector<2x256xf32>
    %78 = math.exp %77 : vector<2x256xf32>
    %cst_41 = arith.constant 1.000000e+00 : f32
    %79 = vector.broadcast %cst_41 : f32 to vector<2x256xf32>
    %80 = arith.addf %79, %78 : vector<2x256xf32>
    %cst_42 = arith.constant 1.000000e+00 : f32
    %81 = vector.broadcast %cst_42 : f32 to vector<2x256xf32>
    %82 = arith.divf %81, %80 : vector<2x256xf32>
    %c0_43 = arith.constant 0 : index
    %c0_44 = arith.constant 0 : index
    %83 = vector.load %arg14[%c0_43, %c0_44] : memref<2x256xf32, #tpu.memory_space<vmem>>, vector<2x256xf32>
    tpu.vector_store %arg14[%c0_43, %c0_44], %82 {strides = array<i32>} : memref<2x256xf32, #tpu.memory_space<vmem>>, vector<2x256xf32>,
    return
  }
  func.func @transform_0(%arg0: i32) -> (i32, i32) {
    %c0_i32 = arith.constant 0 : i32
    %c0_i32_0 = arith.constant 0 : i32
    return %c0_i32, %arg0 : i32, i32
  }
  func.func @transform_1(%arg0: i32) -> (i32, i32) {
    %c0_i32 = arith.constant 0 : i32
    %c0_i32_0 = arith.constant 0 : i32
    %c0_i32_1 = arith.constant 0 : i32
    return %c0_i32, %c0_i32_0 : i32, i32
  }
  func.func @transform_2(%arg0: i32) -> (i32, i32) {
    %c0_i32 = arith.constant 0 : i32
    %c0_i32_0 = arith.constant 0 : i32
    %c0_i32_1 = arith.constant 0 : i32
    return %c0_i32, %c0_i32_0 : i32, i32
  }
  func.func @transform_3(%arg0: i32) -> (i32, i32) {
    %c0_i32 = arith.constant 0 : i32
    %c0_i32_0 = arith.constant 0 : i32
    %c0_i32_1 = arith.constant 0 : i32
    return %c0_i32, %c0_i32_0 : i32, i32
  }
  func.func @transform_4(%arg0: i32) -> (i32, i32) {
    %c0_i32 = arith.constant 0 : i32
    %c0_i32_0 = arith.constant 0 : i32
    %c0_i32_1 = arith.constant 0 : i32
    return %c0_i32, %c0_i32_0 : i32, i32
  }
  func.func @transform_5(%arg0: i32) -> (i32, i32) {
    %c0_i32 = arith.constant 0 : i32
    %c0_i32_0 = arith.constant 0 : i32
    %c0_i32_1 = arith.constant 0 : i32
    return %c0_i32, %c0_i32_0 : i32, i32
  }
  func.func @transform_6(%arg0: i32) -> (i32, i32) {
    %c0_i32 = arith.constant 0 : i32
    %c0_i32_0 = arith.constant 0 : i32
    %c0_i32_1 = arith.constant 0 : i32
    return %c0_i32, %c0_i32_0 : i32, i32
  }
  func.func @transform_7(%arg0: i32) -> (i32, i32) {
    %c0_i32 = arith.constant 0 : i32
    %c0_i32_0 = arith.constant 0 : i32
    %c0_i32_1 = arith.constant 0 : i32
    return %c0_i32, %c0_i32_0 : i32, i32
  }
  func.func @transform_8(%arg0: i32) -> (i32, i32) {
    %c0_i32 = arith.constant 0 : i32
    %c0_i32_0 = arith.constant 0 : i32
    %c0_i32_1 = arith.constant 0 : i32
    return %c0_i32, %c0_i32_0 : i32, i32
  }
  func.func @transform_9(%arg0: i32) -> (i32, i32) {
    %c0_i32 = arith.constant 0 : i32
    %c0_i32_0 = arith.constant 0 : i32
    %c0_i32_1 = arith.constant 0 : i32
    return %c0_i32, %c0_i32_0 : i32, i32
  }
  func.func @transform_10(%arg0: i32) -> (i32, i32) {
    %c0_i32 = arith.constant 0 : i32
    %c0_i32_0 = arith.constant 0 : i32
    %c0_i32_1 = arith.constant 0 : i32
    return %c0_i32, %c0_i32_0 : i32, i32
  }
  func.func @transform_11(%arg0: i32) -> (i32, i32) {
    %c0_i32 = arith.constant 0 : i32
    %c0_i32_0 = arith.constant 0 : i32
    %c0_i32_1 = arith.constant 0 : i32
    return %c0_i32, %c0_i32_0 : i32, i32
  }
  func.func @transform_12(%arg0: i32) -> (i32, i32) {
    %c0_i32 = arith.constant 0 : i32
    %c0_i32_0 = arith.constant 0 : i32
    %c0_i32_1 = arith.constant 0 : i32
    return %c0_i32, %c0_i32_0 : i32, i32
  }
  func.func @transform_13(%arg0: i32) -> (i32, i32) {
    %c0_i32 = arith.constant 0 : i32
    %c0_i32_0 = arith.constant 0 : i32
    return %c0_i32, %arg0 : i32, i32
  }
}

</mosaic_0001>

<bundles_post_ra>
// kernel: net_forward.1
= control target key start
LH: loop header
LB: loop body
LE: loop exit
PB: predicated region body
PF: predicated region fallthrough
CT: control target
= control target key end

     0   :  { %s2588_s0 = inlined_call_operand.vmem [shape: f32[2,512], index: 0, kind: input, shape index: {}]   ;;  %s2589_s1 = inlined_call_operand.vmem [shape: f32[32,2], index: 1, kind: input, shape index: {}]   ;;  %s2590_s2 = inlined_call_operand.vmem [shape: f32[32,1], index: 2, kind: input, shape index: {}]   ;;  %s2591_s3 = inlined_call_operand.vmem [shape: f32[64,32], index: 3, kind: input, shape index: {}]   ;;  %s2592_s4 = inlined_call_operand.vmem [shape: f32[64,1], index: 4, kind: input, shape index: {}]   ;;  %s2593_s5 = inlined_call_operand.vmem [shape: f32[128,64], index: 5, kind: input, shape index: {}]   ;;  %s2594_s6 = inlined_call_operand.vmem [shape: f32[128,1], index: 6, kind: input, shape index: {}]   ;;  %s2595_s7 = inlined_call_operand.vmem [shape: f32[64,128], index: 7, kind: input, shape index: {}]   ;;  %s2596_s8 = inlined_call_operand.vmem [shape: f32[64,1], index: 8, kind: input, shape index: {}]   ;;  %s2597_s9 = inlined_call_operand.vmem [shape: f32[32,64], index: 9, kind: input, shape index: {}]   ;;  %s2598_s10 = inlined_call_operand.vmem [shape: f32[32,1], index: 10, kind: input, shape index: {}]   ;;  %s2599_s11 = inlined_call_operand.vmem [shape: f32[32,2], index: 11, kind: input, shape index: {}]   ;;  %s2600_s12 = inlined_call_operand.vmem [shape: f32[2,1], index: 12, kind: input, shape index: {}]   ;;  %s2601_s13 = inlined_call_operand.hbm [shape: f32[2,512], index: 13, kind: output, shape index: {}]  }
   0x1   :  { %2602 = sst [smem:[#allocation6_spill]] %s2588_s0 }
   0x2   :  { %2603 = sst [smem:[#allocation7_spill]] %s2589_s1 }
   0x3   :  { %18 = vsyncpa [#allocation3], 0 }
   0x4   :  { %20 = vsyncpa [#allocation3 + $0x1], 0  ;;  %s2159_s25 = smov 0   ;;  %s2161_s26 = smov 0  }
   0x5   :  { %s2163_s27 = smov 0   ;;  %s2165_s28 = smov 0  }
   0x6 LB: > { %s2180_s29 = sadd.s32 4294967295, %s2083_s28   ;;  %s1831_s30 = sadd.s32 4294967294, %s2083_s28   ;;  %s2083_s28 = sphi %s2165_s28, %s2613_s28   ;;  %s2079_s27 = sphi %s2163_s27, %s2612_s27   ;;  %s2075_s26 = sphi %s2161_s26, %s2611_s26   ;;  %s2071_s25 = sphi %s2159_s25, %s2610_s25  }
   0x7   : > { %s2184_s14 = sadd.s32 1, %s2083_s28   ;;  %s311_s15 = sadd.s32 1, %s2079_s27 }
   0x8   : > { %s308_s16 = ssub.s32 %s2083_s28, %s2184_s14  ;;  %p321_p0 = scmp.ne.s32.totalorder %s2079_s27, %s2075_s26 }
   0x9   : > { %p309_p1 = scmp.eq.s32.totalorder %s308_s16, 0  ;;  %p322_p2 = scmp.eq.s32.totalorder %s2180_s29, 1 }
   0xa   : > { %p327_p3 = scmp.ne.s32.totalorder %s2075_s26, %s2071_s25  ;;  %p328_p4 = scmp.eq.s32.totalorder %s1831_s30, 1 }
   0xb   : > { %s2195_s17 = scalar_select %p309_p1, %s2079_s27, %s311_s15  }
   0xc   : > { %p2197_p5 = por %p322_p2, %p321_p0  ;;  %p2201_p6 = por %p328_p4, %p327_p3 }
   0xd   : > { %2604 = sst [smem:[#allocation5_spill]] %s2195_s17  ;;  %p1834_p7 = scmp.ge.s32.totalorder %s2083_s28, 1 }
   0xe   : > { %p391_p8 = scmp.lt.s32.totalorder %s2083_s28, 3 }
  0x10   : > { %p392_p9 = pnand %p1834_p7, %p391_p8 }
  0x11   : > { %s2607_s1 = sld [smem:[#allocation7_spill]] (!%p392_p9)  ;;  %v2085_v2 = vmov (!%p392_p9), 1   ;;  %v2086_v4 = vmov (!%p392_p9), 0   ;;  %v545_v6 = vld [vmem:[%s2590_s2 + $0x8] sm:$0xff] (!%p392_p9)  ;;  %v544_v7 = vld [vmem:[%s2590_s2] sm:$0xff] (!%p392_p9)  ;;  %v546_v9 = vld [vmem:[%s2590_s2 + $0x10] sm:$0xff] (!%p392_p9)  ;;  %v468_v49 = vlaneseq (!%p392_p9) }
  0x12   : > { %395 = sbr.rel (%p392_p9) target bundleno = 1267 (0x4f3), region = 72  ;;  %2005 = vset.pattern.permute.xlu0 (!%p392_p9), %v2085_v2  ;;  %2003 = vset.pattern.permute.xlu1 (!%p392_p9), %v2085_v2  ;;  %v608_v8 = vld [vmem:[%s2592_s4] sm:$0xff] (!%p392_p9)  ;;  %v610_v10 = vld [vmem:[%s2592_s4 + $0x10] sm:$0xff] (!%p392_p9)  ;;  %v547_v11 = vld [vmem:[%s2590_s2 + $0x18] sm:$0xff] (!%p392_p9)  ;;  %v2087_v18 = vmov (!%p392_p9), 0.0   ;;  %s1836_s24 = sshll.u32 (!%p392_p9), %s2180_s29, 1 }
  0x13   : > { %v612_v12 = vld [vmem:[%s2592_s4 + $0x20] sm:$0xff] (!%p392_p9)  ;;  %v609_v13 = vld [vmem:[%s2592_s4 + $0x8] sm:$0xff] (!%p392_p9)  ;;  %v614_v14 = vld [vmem:[%s2592_s4 + $0x30] sm:$0xff] (!%p392_p9)  ;;  %745 = vmatprep.mubr.f32.mxu0 (!%p392_p9), %v2087_v18  ;;  %1067 = vmatprep.mubr.f32.mxu1 (!%p392_p9), %v2087_v18  ;;  %p436_p10 = scmp.lt.s32.totalorder (!%p392_p9), %s1836_s24, 3  ;;  %v469_v50 = vshrl.u32 (!%p392_p9), %v468_v49, 7  ;;  %s2608_s0 = sld [smem:[#allocation6_spill]] (!%p392_p9) }
  0x14   : > { %v611_v15 = vld [vmem:[%s2592_s4 + $0x18] sm:$0xff] (!%p392_p9)  ;;  %v858_v16 = vld [vmem:[%s2594_s6] sm:$0xff] (!%p392_p9)  ;;  %v613_v17 = vld [vmem:[%s2592_s4 + $0x28] sm:$0xff] (!%p392_p9)  ;;  %vm656_vm8 = vcmask (!%p392_p9), 261120   ;;  %s432_s16 = sand.u32 (!%p392_p9), 1, %s2075_s26   ;;  %s1872_s20 = sshll.u32 (!%p392_p9), %s2180_s29, 6 }
  0x15   : > { %v860_v19 = vld [vmem:[%s2594_s6 + $0x10] sm:$0xff] (!%p392_p9)  ;;  %v615_v20 = vld [vmem:[%s2592_s4 + $0x38] sm:$0xff] (!%p392_p9)  ;;  %v862_v21 = vld [vmem:[%s2594_s6 + $0x20] sm:$0xff] (!%p392_p9)  ;;  %v470_v53 = vsub.s32 (!%p392_p9), 0, %v469_v50  ;;  %v474_v54 = vsub.s32 (!%p392_p9), 2, %v469_v50  ;;  %v512_v55 = vsub.s32 (!%p392_p9), 1, %v469_v50 }
  0x16   : > { %v859_v22 = vld [vmem:[%s2594_s6 + $0x8] sm:$0xff] (!%p392_p9)  ;;  %v864_v23 = vld [vmem:[%s2594_s6 + $0x30] sm:$0xff] (!%p392_p9)  ;;  %v861_v24 = vld [vmem:[%s2594_s6 + $0x18] sm:$0xff] (!%p392_p9)  ;;  %v516_v56 = vsub.s32 (!%p392_p9), 3, %v469_v50  ;;  %s2088_s29 = smov (!%p392_p9), [#allocation2]  }
  0x17   : > { %v445_v0 = vld [vmem:[%s2607_s1 + $0x10] sm:$0xff] (!%p392_p9)  ;;  %v443_v1 = vld [vmem:[%s2607_s1] sm:$0xff] (!%p392_p9)  ;;  %v444_v3 = vld [vmem:[%s2607_s1 + $0x8] sm:$0xff] (!%p392_p9) }
  0x18   : > { %503 = vperm.xlu0 (!%p392_p9), %2005, %v445_v0   ;;  %495 = vperm.xlu1 (!%p392_p9), %2003, %v443_v1   ;;  %v446_v5 = vld [vmem:[%s2607_s1 + $0x18] sm:$0xff] (!%p392_p9)  ;;  %v866_v25 = vld [vmem:[%s2594_s6 + $0x40] sm:$0xff] (!%p392_p9)  ;;  %v863_v26 = vld [vmem:[%s2594_s6 + $0x28] sm:$0xff] (!%p392_p9) }
  0x19   : > { %v868_v27 = vld [vmem:[%s2594_s6 + $0x50] sm:$0xff]  ;;  %v865_v28 = vld [vmem:[%s2594_s6 + $0x38] sm:$0xff]  ;;  %v870_v29 = vld [vmem:[%s2594_s6 + $0x60] sm:$0xff]  ;;  %s2615_s24 = smov (!%p436_p10, %s1836_s24), 3 }
  0x1a   : > { %v867_v30 = vld [vmem:[%s2594_s6 + $0x48] sm:$0xff]  ;;  %v872_v31 = vld [vmem:[%s2594_s6 + $0x70] sm:$0xff]  ;;  %v869_v32 = vld [vmem:[%s2594_s6 + $0x58] sm:$0xff]  ;;  %s1837_s30 = sshll.u32 %s2615_s24, 1  ;;  %s2546_s24 = scalar_lea.hbm %s2601_s13, %s1872_s20 }
  0x1b   : > { %v1268_v33 = vld [vmem:[%s2596_s8] sm:$0xff]  ;;  %v871_v34 = vld [vmem:[%s2594_s6 + $0x68] sm:$0xff]  ;;  %v1270_v35 = vld [vmem:[%s2596_s8 + $0x10] sm:$0xff]  ;;  %s439_s1 = scalar_lea.vmem %s2608_s0, %s1837_s30  ;;  %s1758_s30 = scalar_lea.sflag [#allocation3], %s432_s16 }
  0x1c   : > { %2006 = vset.pattern.permute.xlu0 %v2086_v4  ;;  %499 = vperm.xlu1 %2003, %v444_v3   ;;  %v873_v36 = vld [vmem:[%s2594_s6 + $0x78] sm:$0xff]  ;;  %v1272_v37 = vld [vmem:[%s2596_s8 + $0x20] sm:$0xff]  ;;  %v1269_v38 = vld [vmem:[%s2596_s8 + $0x8] sm:$0xff] }
  0x1d   : > { %449 = vperm.xlu0 %2006, %v443_v1   ;;  %v1274_v39 = vld [vmem:[%s2596_s8 + $0x30] sm:$0xff]  ;;  %v1271_v40 = vld [vmem:[%s2596_s8 + $0x18] sm:$0xff]  ;;  %v1481_v41 = vld [vmem:[%s2598_s10] sm:$0xff] }
  0x1e   : > { %v1273_v42 = vld [vmem:[%s2596_s8 + $0x28] sm:$0xff]  ;;  %v1483_v43 = vld [vmem:[%s2598_s10 + $0x10] sm:$0xff]  ;;  %v1275_v44 = vld [vmem:[%s2596_s8 + $0x38] sm:$0xff] }
  0x1f   : > { %v1630_v45 = vld [vmem:[%s2599_s11] sm:$0xff]  ;;  %v1482_v46 = vld [vmem:[%s2598_s10 + $0x8] sm:$0xff]  ;;  %v1484_v47 = vld [vmem:[%s2598_s10 + $0x18] sm:$0xff] }
  0x20   : > { %2004 = vset.pattern.permute.xlu1 %v2086_v4  ;;  %v1631_v48 = vld [vmem:[%s2599_s11 + $0x8] sm:$0xff]  ;;  %v442_v58 = vld [vmem:[%s439_s1] sm:$0xf]  ;;  %s1835_s1 = sshll.u32 %s432_s16, 2 }
  0x21   : > { %454 = vperm.xlu0 %2006, %v444_v3   ;;  %464 = vperm.xlu1 %2004, %v446_v5   ;;  %v471_v60 = vrot.slane %v442_v58, %v470_v53  ;;  %v475_v61 = vrot.slane %v442_v58, %v474_v54  ;;  %v513_v62 = vrot.slane %v442_v58, %v512_v55  ;;  %s434_s21 = scalar_lea.vmem [#allocation2], %s1835_s1  ;;  %s2025_s1 = sshll.u32 %s2088_s29, 4  ;;  %s2026_s1 = int_to_ptr.vmem [resolvable:$false] %s2025_s1 }
  0x22   : > { %v517_v63 = vrot.slane %v442_v58, %v516_v56  ;;  %s1772_s22 = sshll.u32 %s434_s21, 4  ;;  %s2027_s0 = scalar_lea.vmem %s2026_s1, 128  ;;  %s2548_s22 = int_to_ptr.vmem [resolvable:$true] %s1772_s22 }
  0x23   : > { %v485_v3 = vrot.slane %v475_v61, %v470_v53  ;;  %s2021_s15 = scalar_lea.vmem %s2548_s22, 64  ;;  %p2028_p0 = scmp.lt.s32.totalorder %s2548_s22, %s2026_s1 }
  0x24   : > { %p2022_p11 = scmp.ne.s32.totalorder %s2548_s22, %s2021_s15  ;;  %p2029_p1 = scmp.lt.s32.totalorder %s2027_s0, %s2021_s15 }
  0x25   : > { %459 = vperm.xlu0 %2006, %v445_v0   ;;  %2007 = vset.pattern.permute.xlu1 %v2085_v2 }
  0x26   : > { %507 = vperm.xlu1 %2007, %v446_v5   ;;  %v523_v5 = vrot.slane %v513_v62, %v512_v55  ;;  %p2023_p12 = pnand %p2022_p11, %p2197_p5  ;;  %p2030_p2 = por %p2029_p1, %p2028_p0 }
  0x28   : > { %p2024_p13 = pneg %p2023_p12 }
  0x29   : > { %555 = vperm.xlu0 %2006, %v545_v6   ;;  %v527_v6 = vrot.slane %v517_v63, %v512_v55 }
  0x2a   : > { %2008 = vset.pattern.permute.xlu1 %v2086_v4  ;;  %p2031_p3 = pnand %p2030_p2, %p2024_p13 }
  0x2b   : > { %550 = vperm.xlu1 %2008, %v544_v7  }
  0x2d   : > { %618 = vperm.xlu0 %2006, %v608_v8  }
  0x2f   : > { %560 = vperm.xlu1 %2008, %v546_v9  }
  0x31   : > { %628 = vperm.xlu0 %2006, %v610_v10  }
  0x33   : > { %565 = vperm.xlu1 %2008, %v547_v11  }
  0x35   : > { %638 = vperm.xlu0 %2006, %v612_v12  }
  0x37   : > { %623 = vperm.xlu1 %2008, %v609_v13  }
  0x39   : > { %648 = vperm.xlu0 %2006, %v614_v14  }
  0x3b   : > { %633 = vperm.xlu1 %2008, %v611_v15  }
  0x3d   : > { %876 = vperm.xlu0 %2006, %v858_v16  }
  0x3f   : > { %643 = vperm.xlu1 %2008, %v613_v17  }
  0x41   : > { %886 = vperm.xlu0 %2006, %v860_v19  }
  0x43   : > { %653 = vperm.xlu1 %2008, %v615_v20  }
  0x45   : > { %896 = vperm.xlu0 %2006, %v862_v21  }
  0x47   : > { %881 = vperm.xlu1 %2008, %v859_v22  }
  0x49   : > { %906 = vperm.xlu0 %2006, %v864_v23  }
  0x4b   : > { %891 = vperm.xlu1 %2008, %v861_v24  }
  0x4d   : > { %916 = vperm.xlu0 %2006, %v866_v25  }
  0x4f   : > { %901 = vperm.xlu1 %2008, %v863_v26  }
  0x51   : > { %926 = vperm.xlu0 %2006, %v868_v27  }
  0x53   : > { %911 = vperm.xlu1 %2008, %v865_v28  }
  0x55   : > { %936 = vperm.xlu0 %2006, %v870_v29  }
  0x57   : > { %921 = vperm.xlu1 %2008, %v867_v30  }
  0x59   : > { %946 = vperm.xlu0 %2006, %v872_v31  }
  0x5b   : > { %931 = vperm.xlu1 %2008, %v869_v32  }
  0x5d   : > { %1278 = vperm.xlu0 %2006, %v1268_v33  }
  0x5f   : > { %941 = vperm.xlu1 %2008, %v871_v34  }
  0x61   : > { %1288 = vperm.xlu0 %2006, %v1270_v35  }
  0x63   : > { %951 = vperm.xlu1 %2008, %v873_v36  }
  0x65   : > { %1298 = vperm.xlu0 %2006, %v1272_v37  }
  0x67   : > { %1283 = vperm.xlu1 %2008, %v1269_v38  }
  0x69   : > { %1308 = vperm.xlu0 %2006, %v1274_v39  }
  0x6b   : > { %1293 = vperm.xlu1 %2008, %v1271_v40  }
  0x6d   : > { %1487 = vperm.xlu0 %2006, %v1481_v41  }
  0x6f   : > { %1303 = vperm.xlu1 %2008, %v1273_v42  }
  0x71   : > { %1497 = vperm.xlu0 %2006, %v1483_v43  }
  0x73   : > { %1313 = vperm.xlu1 %2008, %v1275_v44  }
  0x75   : > { %1636 = vperm.xlu0 %2006, %v1630_v45  }
  0x77   : > { %1492 = vperm.xlu1 %2008, %v1482_v46  }
  0x79   : > { %2009 = vset.pattern.permute.xlu0 %v2085_v2 }
  0x7a   : > { %1681 = vperm.xlu0 %2009, %v1630_v45  }
  0x7b   : > { %1502 = vperm.xlu1 %2008, %v1484_v47  }
  0x7f   : > { %1641 = vperm.xlu1 %2008, %v1631_v48  }
  0x83   : > { %2010 = vset.pattern.permute.xlu1 %v2085_v2  ;;  %v481_v2 = vrot.slane %v471_v60, %v470_v53 }
  0x84   : > { %1685 = vperm.xlu1 %2010, %v1631_v48  }
  0x88   : > { %2011 = vset.pattern.permute.xlu1 %v2086_v4 }
  0x97   : > { %v496_v51 = vpop.permute.xlu1 %495  ;;  %v504_v52 = vpop.permute.xlu0 %503 }
  0x98   : > { %v528_v15 = vmul.f32 %v523_v5, %v496_v51  ;;  %v529_v16 = vmul.f32 %v527_v6, %v496_v51  ;;  %v532_v27 = vmul.f32 %v523_v5, %v504_v52  ;;  %v533_v28 = vmul.f32 %v527_v6, %v504_v52 }
  0x9b   : > { %v500_v57 = vpop.permute.xlu1 %499 }
  0x9c   : > { %v450_v59 = vpop.permute.xlu0 %449  ;;  %v530_v10 = vmul.f32 %v523_v5, %v500_v57  ;;  %v531_v11 = vmul.f32 %v527_v6, %v500_v57 }
  0x9d   : > { %v486_v12 = vmul.f32 %v481_v2, %v450_v59  ;;  %v487_v13 = vmul.f32 %v485_v3, %v450_v59 }
  0x9f   : > { %v536_v25 = vadd.f32 %v528_v15, %v486_v12  ;;  %v537_v26 = vadd.f32 %v529_v16, %v487_v13 }
  0xa0   : > { %v455_v0 = vpop.permute.xlu0 %454  ;;  %v465_v1 = vpop.permute.xlu1 %464 }
  0xa1   : > { %v488_v7 = vmul.f32 %v481_v2, %v455_v0  ;;  %v489_v8 = vmul.f32 %v485_v3, %v455_v0  ;;  %v492_v40 = vmul.f32 %v481_v2, %v465_v1  ;;  %v493_v41 = vmul.f32 %v485_v3, %v465_v1 }
  0xa3   : > { %v538_v17 = vadd.f32 %v530_v10, %v488_v7  ;;  %v539_v19 = vadd.f32 %v531_v11, %v489_v8  ;;  %v604_v7 = vld [vmem:[%s2591_s3 + $0x20] sm:$0xff]  ;;  %v605_v8 = vld [vmem:[%s2591_s3 + $0x28] sm:$0xff]  ;;  %v607_v10 = vld [vmem:[%s2591_s3 + $0x38] sm:$0xff] }
  0xa4   : > { %v460_v9 = vpop.permute.xlu0 %459 }
  0xa5   : > { %v508_v14 = vpop.permute.xlu1 %507  ;;  %v490_v20 = vmul.f32 %v481_v2, %v460_v9  ;;  %v491_v21 = vmul.f32 %v485_v3, %v460_v9  ;;  %v600_v2 = vld [vmem:[%s2591_s3] sm:$0xff]  ;;  %v601_v3 = vld [vmem:[%s2591_s3 + $0x8] sm:$0xff]  ;;  %v606_v9 = vld [vmem:[%s2591_s3 + $0x30] sm:$0xff] }
  0xa6   : > { %v534_v29 = vmul.f32 %v523_v5, %v508_v14  ;;  %v535_v30 = vmul.f32 %v527_v6, %v508_v14  ;;  %v602_v5 = vld [vmem:[%s2591_s3 + $0x10] sm:$0xff]  ;;  %v603_v6 = vld [vmem:[%s2591_s3 + $0x18] sm:$0xff] }
  0xa7   : > { %v540_v35 = vadd.f32 %v532_v27, %v490_v20  ;;  %v541_v36 = vadd.f32 %v533_v28, %v491_v21 }
  0xa8   : > { %v556_v22 = vpop.permute.xlu0 %555  ;;  %v542_v51 = vadd.f32 %v534_v29, %v492_v40  ;;  %v543_v52 = vadd.f32 %v535_v30, %v493_v41 }
  0xa9   : > { %v570_v23 = vadd.f32 %v556_v22, %v538_v17  ;;  %v571_v24 = vadd.f32 %v556_v22, %v539_v19 }
  0xaa   : > { %v551_v31 = vpop.permute.xlu1 %550 }
  0xab   : > { %v586_v32 = vmul.f32 0.01, %v570_v23  ;;  %v568_v33 = vadd.f32 %v551_v31, %v536_v25  ;;  %v569_v34 = vadd.f32 %v551_v31, %v537_v26  ;;  %vm579_vm0 = vcmp.gt.f32.partialorder %v571_v24, 0.0 }
  0xac   : > { %v587_v37 = vmul.f32 0.01, %v571_v24  ;;  %vm578_vm1 = vcmp.gt.f32.partialorder %v570_v23, 0.0  ;;  %v619_v11 = vpop.permute.xlu0 %618 }
  0xad   : > { %v584_v38 = vmul.f32 0.01, %v568_v33  ;;  %vm577_vm2 = vcmp.gt.f32.partialorder %v569_v34, 0.0  ;;  %v585_v39 = vmul.f32 0.01, %v569_v34  ;;  %vm576_vm3 = vcmp.gt.f32.partialorder %v568_v33, 0.0 }
  0xae   : > { %v561_v42 = vpop.permute.xlu1 %560  ;;  %v595_v43 = vsel %vm579_vm0, %v571_v24, %v587_v37  ;;  %v594_v44 = vsel %vm578_vm1, %v570_v23, %v586_v32 }
  0xaf   : > { %v572_v45 = vadd.f32 %v561_v42, %v540_v35  ;;  %v573_v46 = vadd.f32 %v561_v42, %v541_v36  ;;  %v593_v47 = vsel %vm577_vm2, %v569_v34, %v585_v39  ;;  %v592_v48 = vsel %vm576_vm3, %v568_v33, %v584_v38 }
  0xb0   : > { %v1873_v49 = vpack.c.bf16 %v595_v43, %v593_v47  ;;  %v1875_v50 = vpack.c.bf16 %v594_v44, %v592_v48  ;;  %v629_v25 = vpop.permute.xlu0 %628 }
  0xb1   : > { %v588_v54 = vmul.f32 0.01, %v572_v45  ;;  %v589_v55 = vmul.f32 0.01, %v573_v46  ;;  %vm580_vm4 = vcmp.gt.f32.partialorder %v572_v45, 0.0  ;;  %vm581_vm5 = vcmp.gt.f32.partialorder %v573_v46, 0.0 }
  0xb2   : > { %v566_v53 = vpop.permute.xlu1 %565  ;;  %1874 = vmatprep.subr.bf16.mxu0 %v1873_v49 }
  0xb3   : > { %v574_v56 = vadd.f32 %v566_v53, %v542_v51  ;;  %v575_v57 = vadd.f32 %v566_v53, %v543_v52  ;;  %1876 = vmatpush1.bf16.msra.mxu0 %v1875_v50  ;;  %v597_v60 = vsel %vm581_vm5, %v573_v46, %v589_v55  ;;  %v596_v62 = vsel %vm580_vm4, %v572_v45, %v588_v54 }
  0xb4   : > { %v639_v45 = vpop.permute.xlu0 %638 }
  0xb5   : > { %vm582_vm6 = vcmp.gt.f32.partialorder %v574_v56, 0.0  ;;  %vm583_vm7 = vcmp.gt.f32.partialorder %v575_v57, 0.0  ;;  %v590_v58 = vmul.f32 0.01, %v574_v56  ;;  %v591_v59 = vmul.f32 0.01, %v575_v57 }
  0xb6   : > { %v624_v16 = vpop.permute.xlu1 %623 }
  0xb7   : > { %v599_v61 = vsel %vm583_vm7, %v575_v57, %v591_v59  ;;  %v598_v63 = vsel %vm582_vm6, %v574_v56, %v590_v58 }
  0xb8   : > { %v1877_v0 = vpack.c.bf16 %v599_v61, %v597_v60  ;;  %v1879_v1 = vpack.c.bf16 %v598_v63, %v596_v62 }
  0xba   : > { %1878 = vmatprep.subr.bf16.mxu0 %v1877_v0  ;;  %v634_v37 = vpop.permute.xlu1 %633 }
  0xbb   : > { %1880 = vmatpush1.bf16.msra.mxu0 %v1879_v1  ;;  %v649_v1 = vpop.permute.xlu0 %648 }
  0xbe   : > { %1838 = vmatmul.mubr.msk.f32.vlgmr.msra.gmra.mrb[0].mxu0 %vm656_vm8, %v600_v2  ;;  %v644_v57 = vpop.permute.xlu1 %643 }
  0xbf   : > { %751 = vmatprep.mubr.f32.mxu0 %v2087_v18 }
  0xc2   : > { %1839 = vmatmul.mubr.msk.f32.gmra.mrb[2].mxu0 %vm656_vm8, %v601_v3 }
  0xc3   : > { %757 = vmatprep.mubr.f32.mxu0 %v2087_v18 }
  0xc6   : > { %1840 = vmatmul.mubr.msk.f32.gmra.mrb[4].mxu0 %vm656_vm8, %v602_v5 }
  0xc7   : > { %763 = vmatprep.mubr.f32.mxu0 %v2087_v18 }
  0xca   : > { %1841 = vmatmul.mubr.msk.f32.gmra.mrb[6].mxu0 %vm656_vm8, %v603_v6 }
  0xcb   : > { %769 = vmatprep.mubr.f32.mxu0 %v2087_v18 }
  0xce   : > { %1842 = vmatmul.mubr.msk.f32.gmra.mrb[8].mxu0 %vm656_vm8, %v604_v7 }
  0xcf   : > { %775 = vmatprep.mubr.f32.mxu0 %v2087_v18 }
  0xd2   : > { %1843 = vmatmul.mubr.msk.f32.gmra.mrb[10].mxu0 %vm656_vm8, %v605_v8 }
  0xd3   : > { %781 = vmatprep.mubr.f32.mxu0 %v2087_v18 }
  0xd6   : > { %1844 = vmatmul.mubr.msk.f32.gmra.mrb[12].mxu0 %vm656_vm8, %v606_v9 }
  0xd7   : > { %787 = vmatprep.mubr.f32.mxu0 %v2087_v18 }
  0xda   : > { %1845 = vmatmul.mubr.msk.f32.gmra.mrb[14].mxu0 %vm656_vm8, %v607_v10 }
  0xdb   : > { %1380 = vmatprep.mubr.f32.mxu0 %v2087_v18 }
 0x191   : > { %v747_v12 = vpop.f32.mrb[0].mxu0 }
 0x192   : > { %v748_v13 = vadd.f32 %v747_v12, %v619_v11  ;;  %v749_v14 = vpop.f32.mrb[1].mxu0 }
 0x193   : > { %v750_v15 = vadd.f32 %v749_v14, %v619_v11  ;;  %v654_v14 = vpop.permute.xlu1 %653 }
 0x194   : > { %v810_v19 = vmul.f32 0.01, %v748_v13  ;;  %vm794_vm9 = vcmp.gt.f32.partialorder %v748_v13, 0.0 }
 0x195   : > { %v753_v17 = vpop.f32.mrb[2].mxu0  ;;  %v811_v22 = vmul.f32 0.01, %v750_v15  ;;  %vm795_vm10 = vcmp.gt.f32.partialorder %v750_v15, 0.0 }
 0x196   : > { %v754_v20 = vadd.f32 %v753_v17, %v624_v16  ;;  %v755_v21 = vpop.f32.mrb[3].mxu0  ;;  %v826_v30 = vsel %vm794_vm9, %v748_v13, %v810_v19  ;;  %vm954_vm9 = vcmask 523264  }
 0x197   : > { %v756_v23 = vadd.f32 %v755_v21, %v624_v16  ;;  %v827_v33 = vsel %vm795_vm10, %v750_v15, %v811_v22 }
 0x198   : > { %v812_v24 = vmul.f32 0.01, %v754_v20  ;;  %vm796_vm11 = vcmp.gt.f32.partialorder %v754_v20, 0.0 }
 0x199   : > { %v813_v26 = vmul.f32 0.01, %v756_v23  ;;  %v759_v27 = vpop.f32.mrb[4].mxu0  ;;  %vm797_vm12 = vcmp.gt.f32.partialorder %v756_v23, 0.0 }
 0x19a   : > { %v760_v28 = vadd.f32 %v759_v27, %v629_v25  ;;  %v761_v29 = vpop.f32.mrb[5].mxu0  ;;  %v828_v31 = vsel %vm796_vm11, %v754_v20, %v812_v24 }
 0x19b   : > { %v762_v32 = vadd.f32 %v761_v29, %v629_v25  ;;  %v829_v34 = vsel %vm797_vm12, %v756_v23, %v813_v26  ;;  %v1883_v35 = vpack.c.bf16 %v828_v31, %v826_v30  ;;  %v842_v30 = vld [vmem:[%s2593_s5] sm:$0xff]  ;;  %v843_v31 = vld [vmem:[%s2593_s5 + $0x8] sm:$0xff] }
 0x19c   : > { %v1881_v36 = vpack.c.bf16 %v829_v34, %v827_v33  ;;  %v814_v39 = vmul.f32 0.01, %v760_v28  ;;  %vm798_vm13 = vcmp.gt.f32.partialorder %v760_v28, 0.0  ;;  %v845_v33 = vld [vmem:[%s2593_s5 + $0x18] sm:$0xff]  ;;  %v846_v34 = vld [vmem:[%s2593_s5 + $0x20] sm:$0xff] }
 0x19d   : > { %v765_v38 = vpop.f32.mrb[6].mxu0  ;;  %v815_v42 = vmul.f32 0.01, %v762_v32  ;;  %vm799_vm14 = vcmp.gt.f32.partialorder %v762_v32, 0.0 }
 0x19e   : > { %v766_v40 = vadd.f32 %v765_v38, %v634_v37  ;;  %v767_v41 = vpop.f32.mrb[7].mxu0  ;;  %1882 = vmatprep.subr.bf16.mxu1 %v1881_v36  ;;  %v830_v50 = vsel %vm798_vm13, %v760_v28, %v814_v39  ;;  %v848_v36 = vld [vmem:[%s2593_s5 + $0x30] sm:$0xff]  ;;  %v850_v38 = vld [vmem:[%s2593_s5 + $0x40] sm:$0xff]  ;;  %v851_v39 = vld [vmem:[%s2593_s5 + $0x48] sm:$0xff] }
 0x19f   : > { %v768_v43 = vadd.f32 %v767_v41, %v634_v37  ;;  %1884 = vmatpush1.bf16.msra.mxu1 %v1883_v35  ;;  %v831_v53 = vsel %vm799_vm14, %v762_v32, %v815_v42  ;;  %v844_v32 = vld [vmem:[%s2593_s5 + $0x10] sm:$0xff]  ;;  %v847_v35 = vld [vmem:[%s2593_s5 + $0x28] sm:$0xff]  ;;  %v849_v37 = vld [vmem:[%s2593_s5 + $0x38] sm:$0xff] }
 0x1a0   : > { %vm800_vm15 = vcmp.gt.f32.partialorder %v766_v40, 0.0  ;;  %v816_v44 = vmul.f32 0.01, %v766_v40  ;;  %v853_v41 = vld [vmem:[%s2593_s5 + $0x58] sm:$0xff]  ;;  %v854_v42 = vld [vmem:[%s2593_s5 + $0x60] sm:$0xff] }
 0x1a1   : > { %vm801_vm0 = vcmp.gt.f32.partialorder %v768_v43, 0.0  ;;  %v817_v46 = vmul.f32 0.01, %v768_v43  ;;  %v771_v47 = vpop.f32.mrb[8].mxu0 }
 0x1a2   : > { %v772_v48 = vadd.f32 %v771_v47, %v639_v45  ;;  %v773_v49 = vpop.f32.mrb[9].mxu0  ;;  %v832_v51 = vsel %vm800_vm15, %v766_v40, %v816_v44  ;;  %v852_v40 = vld [vmem:[%s2593_s5 + $0x50] sm:$0xff] }
 0x1a3   : > { %v774_v52 = vadd.f32 %v773_v49, %v639_v45  ;;  %v833_v54 = vsel %vm801_vm0, %v768_v43, %v817_v46  ;;  %v1887_v55 = vpack.c.bf16 %v832_v51, %v830_v50  ;;  %v855_v43 = vld [vmem:[%s2593_s5 + $0x68] sm:$0xff]  ;;  %v856_v44 = vld [vmem:[%s2593_s5 + $0x70] sm:$0xff]  ;;  %v857_v45 = vld [vmem:[%s2593_s5 + $0x78] sm:$0xff]  ;;  %v877_v46 = vpop.permute.xlu0 %876  ;;  %v882_v51 = vpop.permute.xlu1 %881 }
 0x1a4   : > { %v1885_v56 = vpack.c.bf16 %v833_v54, %v831_v53  ;;  %v818_v59 = vmul.f32 0.01, %v772_v48  ;;  %vm802_vm1 = vcmp.gt.f32.partialorder %v772_v48, 0.0 }
 0x1a5   : > { %v777_v58 = vpop.f32.mrb[10].mxu0  ;;  %v819_v62 = vmul.f32 0.01, %v774_v52  ;;  %vm803_vm2 = vcmp.gt.f32.partialorder %v774_v52, 0.0 }
 0x1a6   : > { %v778_v60 = vadd.f32 %v777_v58, %v644_v57  ;;  %v779_v61 = vpop.f32.mrb[11].mxu0  ;;  %1886 = vmatprep.subr.bf16.mxu1 %v1885_v56  ;;  %v834_v7 = vsel %vm802_vm1, %v772_v48, %v818_v59 }
 0x1a7   : > { %v780_v63 = vadd.f32 %v779_v61, %v644_v57  ;;  %1888 = vmatpush1.bf16.msra.mxu1 %v1887_v55  ;;  %v835_v10 = vsel %vm803_vm2, %v774_v52, %v819_v62  ;;  %v887_v59 = vpop.permute.xlu0 %886 }
 0x1a8   : > { %vm804_vm3 = vcmp.gt.f32.partialorder %v778_v60, 0.0  ;;  %v820_v0 = vmul.f32 0.01, %v778_v60 }
 0x1a9   : > { %vm805_vm4 = vcmp.gt.f32.partialorder %v780_v63, 0.0  ;;  %v821_v2 = vmul.f32 0.01, %v780_v63  ;;  %v783_v3 = vpop.f32.mrb[12].mxu0 }
 0x1aa   : > { %v784_v5 = vadd.f32 %v783_v3, %v649_v1  ;;  %v785_v6 = vpop.f32.mrb[13].mxu0  ;;  %v836_v8 = vsel %vm804_vm3, %v778_v60, %v820_v0 }
 0x1ab   : > { %v786_v9 = vadd.f32 %v785_v6, %v649_v1  ;;  %v837_v11 = vsel %vm805_vm4, %v780_v63, %v821_v2  ;;  %v1891_v12 = vpack.c.bf16 %v836_v8, %v834_v7  ;;  %v892_v8 = vpop.permute.xlu1 %891 }
 0x1ac   : > { %v1889_v13 = vpack.c.bf16 %v837_v11, %v835_v10  ;;  %v822_v16 = vmul.f32 0.01, %v784_v5  ;;  %vm806_vm5 = vcmp.gt.f32.partialorder %v784_v5, 0.0 }
 0x1ad   : > { %v789_v15 = vpop.f32.mrb[14].mxu0  ;;  %v823_v20 = vmul.f32 0.01, %v786_v9  ;;  %vm807_vm6 = vcmp.gt.f32.partialorder %v786_v9, 0.0 }
 0x1ae   : > { %v790_v17 = vadd.f32 %v789_v15, %v654_v14  ;;  %v791_v19 = vpop.f32.mrb[15].mxu0  ;;  %1890 = vmatprep.subr.bf16.mxu1 %v1889_v13  ;;  %v838_v24 = vsel %vm806_vm5, %v784_v5, %v822_v16  ;;  %v897_v16 = vpop.permute.xlu0 %896 }
 0x1af   : > { %v792_v21 = vadd.f32 %v791_v19, %v654_v14  ;;  %1892 = vmatpush1.bf16.msra.mxu1 %v1891_v12  ;;  %v839_v26 = vsel %vm807_vm6, %v786_v9, %v823_v20 }
 0x1b0   : > { %vm808_vm7 = vcmp.gt.f32.partialorder %v790_v17, 0.0  ;;  %v824_v22 = vmul.f32 0.01, %v790_v17 }
 0x1b1   : > { %vm809_vm8 = vcmp.gt.f32.partialorder %v792_v21, 0.0  ;;  %v825_v23 = vmul.f32 0.01, %v792_v21 }
 0x1b2   : > { %v840_v25 = vsel %vm808_vm7, %v790_v17, %v824_v22 }
 0x1b3   : > { %v841_v27 = vsel %vm809_vm8, %v792_v21, %v825_v23  ;;  %v1895_v28 = vpack.c.bf16 %v840_v25, %v838_v24 }
 0x1b4   : > { %v1893_v29 = vpack.c.bf16 %v841_v27, %v839_v26 }
 0x1b6   : > { %1894 = vmatprep.subr.bf16.mxu1 %v1893_v29  ;;  %v902_v29 = vpop.permute.xlu1 %901 }
 0x1b7   : > { %1896 = vmatpush1.bf16.msra.mxu1 %v1895_v28 }
 0x1ba   : > { %1846 = vmatmul.mubr.msk.f32.vlgmr.msra.gmra.mrb[0].mxu1 %vm954_vm9, %v842_v30 }
 0x1bb   : > { %1073 = vmatprep.mubr.f32.mxu1 %v2087_v18 }
 0x1be   : > { %1847 = vmatmul.mubr.msk.f32.gmra.mrb[2].mxu1 %vm954_vm9, %v843_v31 }
 0x1bf   : > { %1079 = vmatprep.mubr.f32.mxu1 %v2087_v18 }
 0x1c2   : > { %1848 = vmatmul.mubr.msk.f32.gmra.mrb[4].mxu1 %vm954_vm9, %v844_v32 }
 0x1c3   : > { %1085 = vmatprep.mubr.f32.mxu1 %v2087_v18 }
 0x1c6   : > { %1849 = vmatmul.mubr.msk.f32.gmra.mrb[6].mxu1 %vm954_vm9, %v845_v33 }
 0x1c7   : > { %1091 = vmatprep.mubr.f32.mxu1 %v2087_v18 }
 0x1ca   : > { %1850 = vmatmul.mubr.msk.f32.gmra.mrb[8].mxu1 %vm954_vm9, %v846_v34 }
 0x1cb   : > { %1097 = vmatprep.mubr.f32.mxu1 %v2087_v18 }
 0x1ce   : > { %1851 = vmatmul.mubr.msk.f32.gmra.mrb[10].mxu1 %vm954_vm9, %v847_v35 }
 0x1cf   : > { %1103 = vmatprep.mubr.f32.mxu1 %v2087_v18 }
 0x1d2   : > { %1852 = vmatmul.mubr.msk.f32.gmra.mrb[12].mxu1 %vm954_vm9, %v848_v36 }
 0x1d3   : > { %1109 = vmatprep.mubr.f32.mxu1 %v2087_v18 }
 0x1d6   : > { %1853 = vmatmul.mubr.msk.f32.gmra.mrb[14].mxu1 %vm954_vm9, %v849_v37  ;;  %v907_v37 = vpop.permute.xlu0 %906 }
 0x1d7   : > { %1115 = vmatprep.mubr.f32.mxu1 %v2087_v18 }
 0x1da   : > { %1854 = vmatmul.mubr.msk.f32.gmra.mrb[16].mxu1 %vm954_vm9, %v850_v38 }
 0x1db   : > { %1121 = vmatprep.mubr.f32.mxu1 %v2087_v18 }
 0x1de   : > { %1855 = vmatmul.mubr.msk.f32.gmra.mrb[18].mxu1 %vm954_vm9, %v851_v39 }
 0x1df   : > { %1127 = vmatprep.mubr.f32.mxu1 %v2087_v18 }
 0x1e2   : > { %1856 = vmatmul.mubr.msk.f32.gmra.mrb[20].mxu1 %vm954_vm9, %v852_v40 }
 0x1e3   : > { %1133 = vmatprep.mubr.f32.mxu1 %v2087_v18 }
 0x1e6   : > { %1857 = vmatmul.mubr.msk.f32.gmra.mrb[22].mxu1 %vm954_vm9, %v853_v41 }
 0x1e7   : > { %1139 = vmatprep.mubr.f32.mxu1 %v2087_v18 }
 0x1ea   : > { %1858 = vmatmul.mubr.msk.f32.gmra.mrb[24].mxu1 %vm954_vm9, %v854_v42 }
 0x1eb   : > { %1145 = vmatprep.mubr.f32.mxu1 %v2087_v18 }
 0x1ee   : > { %1859 = vmatmul.mubr.msk.f32.gmra.mrb[26].mxu1 %vm954_vm9, %v855_v43 }
 0x1ef   : > { %1151 = vmatprep.mubr.f32.mxu1 %v2087_v18 }
 0x1f2   : > { %1860 = vmatmul.mubr.msk.f32.gmra.mrb[28].mxu1 %vm954_vm9, %v856_v44 }
 0x1f3   : > { %1157 = vmatprep.mubr.f32.mxu1 %v2087_v18 }
 0x1f6   : > { %1861 = vmatmul.mubr.msk.f32.gmra.mrb[30].mxu1 %vm954_vm9, %v857_v45 }
 0x1f7   : > { %1422 = vmatprep.mubr.f32.mxu1 %v2087_v18 }
 0x28d   : > { %v1069_v47 = vpop.f32.mrb[0].mxu1 }
 0x28e   : > { %v1070_v48 = vadd.f32 %v1069_v47, %v877_v46  ;;  %v1071_v49 = vpop.f32.mrb[1].mxu1 }
 0x28f   : > { %v1072_v50 = vadd.f32 %v1071_v49, %v877_v46  ;;  %v912_v49 = vpop.permute.xlu1 %911 }
 0x290   : > { %v1196_v53 = vmul.f32 0.01, %v1070_v48  ;;  %vm1164_vm10 = vcmp.gt.f32.partialorder %v1070_v48, 0.0 }
 0x291   : > { %v1075_v52 = vpop.f32.mrb[2].mxu1  ;;  %v1197_v56 = vmul.f32 0.01, %v1072_v50  ;;  %vm1165_vm11 = vcmp.gt.f32.partialorder %v1072_v50, 0.0 }
 0x292   : > { %v1076_v54 = vadd.f32 %v1075_v52, %v882_v51  ;;  %v1077_v55 = vpop.f32.mrb[3].mxu1  ;;  %v1228_v62 = vsel %vm1164_vm10, %v1070_v48, %v1196_v53 }
 0x293   : > { %v1078_v57 = vadd.f32 %v1077_v55, %v882_v51  ;;  %v1229_v5 = vsel %vm1165_vm11, %v1072_v50, %v1197_v56 }
 0x294   : > { %vm1166_vm12 = vcmp.gt.f32.partialorder %v1076_v54, 0.0  ;;  %v1198_v58 = vmul.f32 0.01, %v1076_v54 }
 0x295   : > { %vm1167_vm13 = vcmp.gt.f32.partialorder %v1078_v57, 0.0  ;;  %v1199_v60 = vmul.f32 0.01, %v1078_v57  ;;  %v1081_v61 = vpop.f32.mrb[4].mxu1 }
 0x296   : > { %v1230_v63 = vsel %vm1166_vm12, %v1076_v54, %v1198_v58  ;;  %v1082_v0 = vadd.f32 %v1081_v61, %v887_v59  ;;  %v1083_v1 = vpop.f32.mrb[5].mxu1 }
 0x297   : > { %v1899_v2 = vpack.c.bf16 %v1230_v63, %v1228_v62  ;;  %v1084_v3 = vadd.f32 %v1083_v1, %v887_v59  ;;  %v1231_v6 = vsel %vm1167_vm13, %v1078_v57, %v1199_v60  ;;  %v917_v57 = vpop.permute.xlu0 %916 }
 0x298   : > { %v1897_v7 = vpack.c.bf16 %v1231_v6, %v1229_v5  ;;  %v1200_v10 = vmul.f32 0.01, %v1082_v0  ;;  %vm1168_vm14 = vcmp.gt.f32.partialorder %v1082_v0, 0.0  ;;  %v922_v6 = vpop.permute.xlu1 %921 }
 0x299   : > { %v1087_v9 = vpop.f32.mrb[6].mxu1  ;;  %v1201_v13 = vmul.f32 0.01, %v1084_v3  ;;  %vm1169_vm15 = vcmp.gt.f32.partialorder %v1084_v3, 0.0 }
 0x29a   : > { %v1088_v11 = vadd.f32 %v1087_v9, %v892_v8  ;;  %v1089_v12 = vpop.f32.mrb[7].mxu1  ;;  %1898 = vmatprep.subr.bf16.mxu0 %v1897_v7  ;;  %1945 = vmatprep.subr.bf16.mxu1 %v1897_v7  ;;  %v1232_v20 = vsel %vm1168_vm14, %v1082_v0, %v1200_v10 }
 0x29b   : > { %v1090_v14 = vadd.f32 %v1089_v12, %v892_v8  ;;  %1900 = vmatpush1.bf16.msra.mxu0 %v1899_v2  ;;  %1953 = vmatpush1.bf16.msra.mxu1 %v1899_v2  ;;  %v1233_v26 = vsel %vm1169_vm15, %v1084_v3, %v1201_v13 }
 0x29c   : > { %vm1170_vm0 = vcmp.gt.f32.partialorder %v1088_v11, 0.0  ;;  %v1202_v15 = vmul.f32 0.01, %v1088_v11 }
 0x29d   : > { %vm1171_vm1 = vcmp.gt.f32.partialorder %v1090_v14, 0.0  ;;  %v1203_v17 = vmul.f32 0.01, %v1090_v14  ;;  %v1093_v19 = vpop.f32.mrb[8].mxu1 }
 0x29e   : > { %v1234_v21 = vsel %vm1170_vm0, %v1088_v11, %v1202_v15  ;;  %v1094_v22 = vadd.f32 %v1093_v19, %v897_v16  ;;  %v1095_v23 = vpop.f32.mrb[9].mxu1 }
 0x29f   : > { %v1903_v24 = vpack.c.bf16 %v1234_v21, %v1232_v20  ;;  %v1096_v25 = vadd.f32 %v1095_v23, %v897_v16  ;;  %v1235_v27 = vsel %vm1171_vm1, %v1090_v14, %v1203_v17  ;;  %v927_v14 = vpop.permute.xlu0 %926 }
 0x2a0   : > { %v1901_v28 = vpack.c.bf16 %v1235_v27, %v1233_v26  ;;  %v1204_v31 = vmul.f32 0.01, %v1094_v22  ;;  %vm1172_vm2 = vcmp.gt.f32.partialorder %v1094_v22, 0.0  ;;  %v932_v27 = vpop.permute.xlu1 %931 }
 0x2a1   : > { %v1099_v30 = vpop.f32.mrb[10].mxu1  ;;  %v1205_v34 = vmul.f32 0.01, %v1096_v25  ;;  %vm1173_vm3 = vcmp.gt.f32.partialorder %v1096_v25, 0.0 }
 0x2a2   : > { %v1100_v32 = vadd.f32 %v1099_v30, %v902_v29  ;;  %v1101_v33 = vpop.f32.mrb[11].mxu1  ;;  %1902 = vmatprep.subr.bf16.mxu0 %v1901_v28  ;;  %1946 = vmatprep.subr.bf16.mxu1 %v1901_v28  ;;  %v1236_v40 = vsel %vm1172_vm2, %v1094_v22, %v1204_v31 }
 0x2a3   : > { %v1102_v35 = vadd.f32 %v1101_v33, %v902_v29  ;;  %1904 = vmatpush1.bf16.msra.mxu0 %v1903_v24  ;;  %1954 = vmatpush1.bf16.msra.mxu1 %v1903_v24  ;;  %v1237_v46 = vsel %vm1173_vm3, %v1096_v25, %v1205_v34 }
 0x2a4   : > { %vm1174_vm4 = vcmp.gt.f32.partialorder %v1100_v32, 0.0  ;;  %v1206_v36 = vmul.f32 0.01, %v1100_v32 }
 0x2a5   : > { %vm1175_vm5 = vcmp.gt.f32.partialorder %v1102_v35, 0.0  ;;  %v1207_v38 = vmul.f32 0.01, %v1102_v35  ;;  %v1105_v39 = vpop.f32.mrb[12].mxu1 }
 0x2a6   : > { %v1238_v41 = vsel %vm1174_vm4, %v1100_v32, %v1206_v36  ;;  %v1106_v42 = vadd.f32 %v1105_v39, %v907_v37  ;;  %v1107_v43 = vpop.f32.mrb[13].mxu1 }
 0x2a7   : > { %v1907_v44 = vpack.c.bf16 %v1238_v41, %v1236_v40  ;;  %v1108_v45 = vadd.f32 %v1107_v43, %v907_v37  ;;  %v1239_v47 = vsel %vm1175_vm5, %v1102_v35, %v1207_v38  ;;  %v937_v35 = vpop.permute.xlu0 %936 }
 0x2a8   : > { %v1905_v48 = vpack.c.bf16 %v1239_v47, %v1237_v46  ;;  %v1208_v51 = vmul.f32 0.01, %v1106_v42  ;;  %vm1176_vm6 = vcmp.gt.f32.partialorder %v1106_v42, 0.0  ;;  %v942_v47 = vpop.permute.xlu1 %941 }
 0x2a9   : > { %v1111_v50 = vpop.f32.mrb[14].mxu1  ;;  %v1209_v54 = vmul.f32 0.01, %v1108_v45  ;;  %vm1177_vm7 = vcmp.gt.f32.partialorder %v1108_v45, 0.0 }
 0x2aa   : > { %v1112_v52 = vadd.f32 %v1111_v50, %v912_v49  ;;  %v1113_v53 = vpop.f32.mrb[15].mxu1  ;;  %1906 = vmatprep.subr.bf16.mxu0 %v1905_v48  ;;  %1947 = vmatprep.subr.bf16.mxu1 %v1905_v48  ;;  %v1240_v60 = vsel %vm1176_vm6, %v1106_v42, %v1208_v51 }
 0x2ab   : > { %v1114_v55 = vadd.f32 %v1113_v53, %v912_v49  ;;  %1908 = vmatpush1.bf16.msra.mxu0 %v1907_v44  ;;  %1955 = vmatpush1.bf16.msra.mxu1 %v1907_v44  ;;  %v1241_v2 = vsel %vm1177_vm7, %v1108_v45, %v1209_v54 }
 0x2ac   : > { %vm1178_vm8 = vcmp.gt.f32.partialorder %v1112_v52, 0.0  ;;  %v1210_v56 = vmul.f32 0.01, %v1112_v52 }
 0x2ad   : > { %vm1179_vm10 = vcmp.gt.f32.partialorder %v1114_v55, 0.0  ;;  %v1211_v58 = vmul.f32 0.01, %v1114_v55  ;;  %v1117_v59 = vpop.f32.mrb[16].mxu1 }
 0x2ae   : > { %v1242_v61 = vsel %vm1178_vm8, %v1112_v52, %v1210_v56  ;;  %v1118_v62 = vadd.f32 %v1117_v59, %v917_v57  ;;  %v1119_v63 = vpop.f32.mrb[17].mxu1 }
 0x2af   : > { %v1911_v0 = vpack.c.bf16 %v1242_v61, %v1240_v60  ;;  %v1120_v1 = vadd.f32 %v1119_v63, %v917_v57  ;;  %v1243_v3 = vsel %vm1179_vm10, %v1114_v55, %v1211_v58  ;;  %v947_v55 = vpop.permute.xlu0 %946 }
 0x2b0   : > { %v1909_v5 = vpack.c.bf16 %v1243_v3, %v1241_v2  ;;  %v1212_v8 = vmul.f32 0.01, %v1118_v62  ;;  %vm1180_vm11 = vcmp.gt.f32.partialorder %v1118_v62, 0.0  ;;  %v952_v3 = vpop.permute.xlu1 %951 }
 0x2b1   : > { %v1123_v7 = vpop.f32.mrb[18].mxu1  ;;  %v1213_v11 = vmul.f32 0.01, %v1120_v1  ;;  %vm1181_vm12 = vcmp.gt.f32.partialorder %v1120_v1, 0.0 }
 0x2b2   : > { %v1124_v9 = vadd.f32 %v1123_v7, %v922_v6  ;;  %v1125_v10 = vpop.f32.mrb[19].mxu1  ;;  %1910 = vmatprep.subr.bf16.mxu0 %v1909_v5  ;;  %1948 = vmatprep.subr.bf16.mxu1 %v1909_v5  ;;  %v1244_v17 = vsel %vm1180_vm11, %v1118_v62, %v1212_v8 }
 0x2b3   : > { %v1126_v12 = vadd.f32 %v1125_v10, %v922_v6  ;;  %1912 = vmatpush1.bf16.msra.mxu0 %v1911_v0  ;;  %1956 = vmatpush1.bf16.msra.mxu1 %v1911_v0  ;;  %v1245_v24 = vsel %vm1181_vm12, %v1120_v1, %v1213_v11 }
 0x2b4   : > { %vm1182_vm13 = vcmp.gt.f32.partialorder %v1124_v9, 0.0  ;;  %v1214_v13 = vmul.f32 0.01, %v1124_v9 }
 0x2b5   : > { %vm1183_vm14 = vcmp.gt.f32.partialorder %v1126_v12, 0.0  ;;  %v1215_v15 = vmul.f32 0.01, %v1126_v12  ;;  %v1129_v16 = vpop.f32.mrb[20].mxu1 }
 0x2b6   : > { %v1246_v19 = vsel %vm1182_vm13, %v1124_v9, %v1214_v13  ;;  %v1130_v20 = vadd.f32 %v1129_v16, %v927_v14  ;;  %v1131_v21 = vpop.f32.mrb[21].mxu1 }
 0x2b7   : > { %v1915_v22 = vpack.c.bf16 %v1246_v19, %v1244_v17  ;;  %v1132_v23 = vadd.f32 %v1131_v21, %v927_v14  ;;  %v1247_v25 = vsel %vm1183_vm14, %v1126_v12, %v1215_v15  ;;  %v1267_v21 = vld [vmem:[%s2595_s7 + $0x38] sm:$0xff] }
 0x2b8   : > { %v1913_v26 = vpack.c.bf16 %v1247_v25, %v1245_v24  ;;  %v1216_v29 = vmul.f32 0.01, %v1130_v20  ;;  %vm1184_vm15 = vcmp.gt.f32.partialorder %v1130_v20, 0.0  ;;  %v1263_v24 = vld [vmem:[%s2595_s7 + $0x18] sm:$0xff]  ;;  %v1264_v25 = vld [vmem:[%s2595_s7 + $0x20] sm:$0xff] }
 0x2b9   : > { %v1135_v28 = vpop.f32.mrb[22].mxu1  ;;  %v1217_v32 = vmul.f32 0.01, %v1132_v23  ;;  %vm1185_vm0 = vcmp.gt.f32.partialorder %v1132_v23, 0.0 }
 0x2ba   : > { %v1136_v30 = vadd.f32 %v1135_v28, %v932_v27  ;;  %v1137_v31 = vpop.f32.mrb[23].mxu1  ;;  %1914 = vmatprep.subr.bf16.mxu0 %v1913_v26  ;;  %1949 = vmatprep.subr.bf16.mxu1 %v1913_v26  ;;  %v1248_v38 = vsel %vm1184_vm15, %v1130_v20, %v1216_v29  ;;  %v1260_v20 = vld [vmem:[%s2595_s7] sm:$0xff]  ;;  %v1265_v26 = vld [vmem:[%s2595_s7 + $0x28] sm:$0xff]  ;;  %v1632_v28 = vld [vmem:[%s2599_s11 + $0x10] sm:$0xff] }
 0x2bb   : > { %v1138_v33 = vadd.f32 %v1137_v31, %v932_v27  ;;  %1916 = vmatpush1.bf16.msra.mxu0 %v1915_v22  ;;  %1957 = vmatpush1.bf16.msra.mxu1 %v1915_v22  ;;  %v1249_v44 = vsel %vm1185_vm0, %v1132_v23, %v1217_v32  ;;  %v1261_v22 = vld [vmem:[%s2595_s7 + $0x8] sm:$0xff]  ;;  %v1262_v23 = vld [vmem:[%s2595_s7 + $0x10] sm:$0xff]  ;;  %v1633_v29 = vld [vmem:[%s2599_s11 + $0x18] sm:$0xff]  ;;  %v1279_v31 = vpop.permute.xlu0 %1278  ;;  %v1284_v32 = vpop.permute.xlu1 %1283 }
 0x2bc   : > { %vm1186_vm1 = vcmp.gt.f32.partialorder %v1136_v30, 0.0  ;;  %v1218_v34 = vmul.f32 0.01, %v1136_v30  ;;  %v1266_v27 = vld [vmem:[%s2595_s7 + $0x30] sm:$0xff]  ;;  %1689 = vperm.xlu0 %2009, %v1632_v28   ;;  %1646 = vperm.xlu1 %2011, %v1632_v28  }
 0x2bd   : > { %vm1187_vm2 = vcmp.gt.f32.partialorder %v1138_v33, 0.0  ;;  %v1219_v36 = vmul.f32 0.01, %v1138_v33  ;;  %v1141_v37 = vpop.f32.mrb[24].mxu1 }
 0x2be   : > { %v1250_v39 = vsel %vm1186_vm1, %v1136_v30, %v1218_v34  ;;  %v1142_v40 = vadd.f32 %v1141_v37, %v937_v35  ;;  %v1143_v41 = vpop.f32.mrb[25].mxu1  ;;  %v1725_v30 = vld [vmem:[%s2600_s12] sm:$0x3] }
 0x2bf   : > { %v1919_v42 = vpack.c.bf16 %v1250_v39, %v1248_v38  ;;  %v1144_v43 = vadd.f32 %v1143_v41, %v937_v35  ;;  %v1251_v45 = vsel %vm1187_vm2, %v1138_v33, %v1219_v36 }
 0x2c0   : > { %v1917_v46 = vpack.c.bf16 %v1251_v45, %v1249_v44  ;;  %v1220_v49 = vmul.f32 0.01, %v1142_v40  ;;  %vm1188_vm3 = vcmp.gt.f32.partialorder %v1142_v40, 0.0  ;;  %1693 = vperm.xlu0 %2009, %v1633_v29   ;;  %1651 = vperm.xlu1 %2011, %v1633_v29  }
 0x2c1   : > { %v1147_v48 = vpop.f32.mrb[26].mxu1  ;;  %v1221_v52 = vmul.f32 0.01, %v1144_v43  ;;  %vm1189_vm4 = vcmp.gt.f32.partialorder %v1144_v43, 0.0 }
 0x2c2   : > { %v1148_v50 = vadd.f32 %v1147_v48, %v942_v47  ;;  %v1149_v51 = vpop.f32.mrb[27].mxu1  ;;  %1918 = vmatprep.subr.bf16.mxu0 %v1917_v46  ;;  %1950 = vmatprep.subr.bf16.mxu1 %v1917_v46  ;;  %v1252_v58 = vsel %vm1188_vm3, %v1142_v40, %v1220_v49  ;;  %v1294_v40 = vpop.permute.xlu1 %1293 }
 0x2c3   : > { %v1150_v53 = vadd.f32 %v1149_v51, %v942_v47  ;;  %1920 = vmatpush1.bf16.msra.mxu0 %v1919_v42  ;;  %1958 = vmatpush1.bf16.msra.mxu1 %v1919_v42  ;;  %v1253_v0 = vsel %vm1189_vm4, %v1144_v43, %v1221_v52  ;;  %v1289_v46 = vpop.permute.xlu0 %1288 }
 0x2c4   : > { %vm1190_vm5 = vcmp.gt.f32.partialorder %v1148_v50, 0.0  ;;  %v1222_v54 = vmul.f32 0.01, %v1148_v50  ;;  %1728 = vperm.xlu1 %2011, %v1725_v30   ;;  %2012 = vset.pattern.permute.xlu0 %v2086_v4 }
 0x2c5   : > { %vm1191_vm6 = vcmp.gt.f32.partialorder %v1150_v53, 0.0  ;;  %v1223_v56 = vmul.f32 0.01, %v1150_v53  ;;  %v1153_v57 = vpop.f32.mrb[28].mxu1 }
 0x2c6   : > { %v1254_v59 = vsel %vm1190_vm5, %v1148_v50, %v1222_v54  ;;  %v1154_v60 = vadd.f32 %v1153_v57, %v947_v55  ;;  %v1155_v61 = vpop.f32.mrb[29].mxu1  ;;  %v1304_v57 = vpop.permute.xlu1 %1303 }
 0x2c7   : > { %v1923_v62 = vpack.c.bf16 %v1254_v59, %v1252_v58  ;;  %v1156_v63 = vadd.f32 %v1155_v61, %v947_v55  ;;  %v1255_v1 = vsel %vm1191_vm6, %v1150_v53, %v1223_v56 }
 0x2c8   : > { %v1921_v2 = vpack.c.bf16 %v1255_v1, %v1253_v0  ;;  %v1224_v6 = vmul.f32 0.01, %v1154_v60  ;;  %vm1192_vm7 = vcmp.gt.f32.partialorder %v1154_v60, 0.0 }
 0x2c9   : > { %v1159_v5 = vpop.f32.mrb[30].mxu1  ;;  %v1225_v9 = vmul.f32 0.01, %v1156_v63  ;;  %vm1193_vm8 = vcmp.gt.f32.partialorder %v1156_v63, 0.0 }
 0x2ca   : > { %v1160_v7 = vadd.f32 %v1159_v5, %v952_v3  ;;  %v1161_v8 = vpop.f32.mrb[31].mxu1  ;;  %1922 = vmatprep.subr.bf16.mxu0 %v1921_v2  ;;  %1951 = vmatprep.subr.bf16.mxu1 %v1921_v2  ;;  %v1256_v13 = vsel %vm1192_vm7, %v1154_v60, %v1224_v6  ;;  %v1299_v2 = vpop.permute.xlu0 %1298 }
 0x2cb   : > { %v1162_v10 = vadd.f32 %v1161_v8, %v952_v3  ;;  %1924 = vmatpush1.bf16.msra.mxu0 %v1923_v62  ;;  %1959 = vmatpush1.bf16.msra.mxu1 %v1923_v62  ;;  %v1257_v16 = vsel %vm1193_vm8, %v1156_v63, %v1225_v9 }
 0x2cc   : > { %vm1194_vm10 = vcmp.gt.f32.partialorder %v1160_v7, 0.0  ;;  %v1226_v11 = vmul.f32 0.01, %v1160_v7 }
 0x2cd   : > { %vm1195_vm11 = vcmp.gt.f32.partialorder %v1162_v10, 0.0  ;;  %v1227_v12 = vmul.f32 0.01, %v1162_v10 }
 0x2ce   : > { %v1258_v14 = vsel %vm1194_vm10, %v1160_v7, %v1226_v11 }
 0x2cf   : > { %v1927_v15 = vpack.c.bf16 %v1258_v14, %v1256_v13  ;;  %v1259_v17 = vsel %vm1195_vm11, %v1162_v10, %v1227_v12  ;;  %v1314_v10 = vpop.permute.xlu1 %1313 }
 0x2d0   : > { %v1925_v19 = vpack.c.bf16 %v1259_v17, %v1257_v16 }
 0x2d2   : > { %1926 = vmatprep.subr.bf16.mxu0 %v1925_v19  ;;  %1952 = vmatprep.subr.bf16.mxu1 %v1925_v19 }
 0x2d3   : > { %1928 = vmatpush1.bf16.msra.mxu0 %v1927_v15  ;;  %1960 = vmatpush1.bf16.msra.mxu1 %v1927_v15 }
 0x2d6   : > { %1381 = vmatmul.mubr.f32.vlgmr.msra.gmra.mrb[16].mxu0 %v1260_v20  ;;  %1423 = vmatmul.mubr.f32.vlgmr.msra.gmra.mrb[32].mxu1 %v1267_v21 }
 0x2d7   : > { %1386 = vmatprep.mubr.f32.mxu0 %v2087_v18 }
 0x2da   : > { %1387 = vmatmul.mubr.f32.gmra.mrb[18].mxu0 %v1261_v22 }
 0x2db   : > { %1392 = vmatprep.mubr.f32.mxu0 %v2087_v18 }
 0x2de   : > { %1393 = vmatmul.mubr.f32.gmra.mrb[20].mxu0 %v1262_v23 }
 0x2df   : > { %1398 = vmatprep.mubr.f32.mxu0 %v2087_v18 }
 0x2e2   : > { %1399 = vmatmul.mubr.f32.gmra.mrb[22].mxu0 %v1263_v24 }
 0x2e3   : > { %1404 = vmatprep.mubr.f32.mxu0 %v2087_v18 }
 0x2e6   : > { %1405 = vmatmul.mubr.f32.gmra.mrb[24].mxu0 %v1264_v25 }
 0x2e7   : > { %1410 = vmatprep.mubr.f32.mxu0 %v2087_v18 }
 0x2ea   : > { %1411 = vmatmul.mubr.f32.gmra.mrb[26].mxu0 %v1265_v26  ;;  %v1309_v26 = vpop.permute.xlu0 %1308 }
 0x2eb   : > { %1416 = vmatprep.mubr.f32.mxu0 %v2087_v18 }
 0x2ee   : > { %1417 = vmatmul.mubr.f32.gmra.mrb[28].mxu0 %v1266_v27 }
 0x2ef   : > { %1581 = vmatprep.mubr.f32.mxu0 %v2087_v18 }
 0x3a9   : > { %v1382_v33 = vpop.f32.mrb[16].mxu0  ;;  %v1424_v34 = vpop.f32.mrb[32].mxu1 }
 0x3aa   : > { %v1384_v35 = vpop.f32.mrb[17].mxu0  ;;  %v1426_v36 = vpop.f32.mrb[33].mxu1  ;;  %v1383_v37 = vadd.f32 %v1382_v33, %v1279_v31  ;;  %v1425_v15 = vadd.f32 %v1424_v34, %v1314_v10 }
 0x3ab   : > { %v1385_v38 = vadd.f32 %v1384_v35, %v1279_v31  ;;  %v1427_v19 = vadd.f32 %v1426_v36, %v1314_v10 }
 0x3ac   : > { %v1445_v41 = vmul.f32 0.01, %v1383_v37  ;;  %vm1429_vm12 = vcmp.gt.f32.partialorder %v1383_v37, 0.0  ;;  %vm1443_vm5 = vcmp.gt.f32.partialorder %v1425_v15, 0.0  ;;  %v1459_v27 = vmul.f32 0.01, %v1425_v15 }
 0x3ad   : > { %v1388_v39 = vpop.f32.mrb[18].mxu0  ;;  %v1446_v44 = vmul.f32 0.01, %v1385_v38  ;;  %vm1430_vm13 = vcmp.gt.f32.partialorder %v1385_v38, 0.0  ;;  %v1460_v30 = vmul.f32 0.01, %v1427_v19 }
 0x3ae   : > { %v1389_v42 = vadd.f32 %v1388_v39, %v1284_v32  ;;  %v1390_v43 = vpop.f32.mrb[19].mxu0  ;;  %v1461_v51 = vsel %vm1429_vm12, %v1383_v37, %v1445_v41  ;;  %vm1444_vm10 = vcmp.gt.f32.partialorder %v1427_v19, 0.0 }
 0x3af   : > { %v1391_v45 = vadd.f32 %v1390_v43, %v1284_v32  ;;  %v1462_v55 = vsel %vm1430_vm13, %v1385_v38, %v1446_v44 }
 0x3b0   : > { %vm1431_vm14 = vcmp.gt.f32.partialorder %v1389_v42, 0.0  ;;  %v1447_v4 = vmul.f32 0.01, %v1389_v42 }
 0x3b1   : > { %v1394_v47 = vpop.f32.mrb[20].mxu0  ;;  %vm1432_vm15 = vcmp.gt.f32.partialorder %v1391_v45, 0.0  ;;  %v1448_v48 = vmul.f32 0.01, %v1391_v45 }
 0x3b2   : > { %v1395_v49 = vadd.f32 %v1394_v47, %v1289_v46  ;;  %v1396_v50 = vpop.f32.mrb[21].mxu0  ;;  %v1463_v52 = vsel %vm1431_vm14, %v1389_v42, %v1447_v4  ;;  %v1475_v42 = vsel %vm1443_vm5, %v1425_v15, %v1459_v27  ;;  %v1477_v47 = vld [vmem:[%s2597_s9] sm:$0xff] }
 0x3b3   : > { %v1397_v53 = vadd.f32 %v1396_v50, %v1289_v46  ;;  %v1931_v54 = vpack.c.bf16 %v1463_v52, %v1461_v51  ;;  %v1464_v56 = vsel %vm1432_vm15, %v1391_v45, %v1448_v48  ;;  %v1476_v46 = vsel %vm1444_vm10, %v1427_v19, %v1460_v30  ;;  %v1478_v48 = vld [vmem:[%s2597_s9 + $0x8] sm:$0xff]  ;;  %v1480_v50 = vld [vmem:[%s2597_s9 + $0x18] sm:$0xff]  ;;  %v1488_v51 = vpop.permute.xlu0 %1487  ;;  %v1493_v52 = vpop.permute.xlu1 %1492 }
 0x3b4   : > { %v1929_v59 = vpack.c.bf16 %v1464_v56, %v1462_v55  ;;  %v1449_v60 = vmul.f32 0.01, %v1395_v49  ;;  %vm1433_vm0 = vcmp.gt.f32.partialorder %v1395_v49, 0.0 }
 0x3b5   : > { %v1400_v58 = vpop.f32.mrb[22].mxu0  ;;  %v1450_v63 = vmul.f32 0.01, %v1397_v53  ;;  %vm1434_vm1 = vcmp.gt.f32.partialorder %v1397_v53, 0.0 }
 0x3b6   : > { %v1401_v61 = vadd.f32 %v1400_v58, %v1294_v40  ;;  %v1402_v62 = vpop.f32.mrb[23].mxu0  ;;  %1930 = vmatprep.subr.bf16.mxu0 %v1929_v59  ;;  %v1465_v6 = vsel %vm1433_vm0, %v1395_v49, %v1449_v60  ;;  %v1479_v49 = vld [vmem:[%s2597_s9 + $0x10] sm:$0xff] }
 0x3b7   : > { %v1403_v0 = vadd.f32 %v1402_v62, %v1294_v40  ;;  %1932 = vmatpush1.bf16.msra.mxu0 %v1931_v54  ;;  %v1466_v13 = vsel %vm1434_vm1, %v1397_v53, %v1450_v63  ;;  %v1498_v53 = vpop.permute.xlu0 %1497  ;;  %v1503_v54 = vpop.permute.xlu1 %1502 }
 0x3b8   : > { %vm1435_vm2 = vcmp.gt.f32.partialorder %v1401_v61, 0.0  ;;  %v1451_v1 = vmul.f32 0.01, %v1401_v61 }
 0x3b9   : > { %vm1436_vm3 = vcmp.gt.f32.partialorder %v1403_v0, 0.0  ;;  %v1452_v3 = vmul.f32 0.01, %v1403_v0  ;;  %v1406_v5 = vpop.f32.mrb[24].mxu0 }
 0x3ba   : > { %v1467_v7 = vsel %vm1435_vm2, %v1401_v61, %v1451_v1  ;;  %v1407_v8 = vadd.f32 %v1406_v5, %v1299_v2  ;;  %v1408_v9 = vpop.f32.mrb[25].mxu0 }
 0x3bb   : > { %v1935_v11 = vpack.c.bf16 %v1467_v7, %v1465_v6  ;;  %v1409_v12 = vadd.f32 %v1408_v9, %v1299_v2  ;;  %v1468_v14 = vsel %vm1436_vm3, %v1403_v0, %v1452_v3  ;;  %v1637_v55 = vpop.permute.xlu0 %1636 }
 0x3bc   : > { %v1933_v16 = vpack.c.bf16 %v1468_v14, %v1466_v13  ;;  %v1453_v20 = vmul.f32 0.01, %v1407_v8  ;;  %vm1437_vm4 = vcmp.gt.f32.partialorder %v1407_v8, 0.0 }
 0x3bd   : > { %v1412_v17 = vpop.f32.mrb[26].mxu0  ;;  %v1454_v23 = vmul.f32 0.01, %v1409_v12  ;;  %vm1438_vm6 = vcmp.gt.f32.partialorder %v1409_v12, 0.0 }
 0x3be   : > { %v1413_v21 = vadd.f32 %v1412_v17, %v1304_v57  ;;  %v1414_v22 = vpop.f32.mrb[27].mxu0  ;;  %1934 = vmatprep.subr.bf16.mxu0 %v1933_v16  ;;  %v1469_v31 = vsel %vm1437_vm4, %v1407_v8, %v1453_v20  ;;  %vm1722_vm4 = vcmask 1040384  }
 0x3bf   : > { %v1415_v24 = vadd.f32 %v1414_v22, %v1304_v57  ;;  %1936 = vmatpush1.bf16.msra.mxu0 %v1935_v11  ;;  %v1470_v37 = vsel %vm1438_vm6, %v1409_v12, %v1454_v23  ;;  %v1642_v57 = vpop.permute.xlu1 %1641  ;;  %v1682_v63 = vpop.permute.xlu0 %1681 }
 0x3c0   : > { %vm1439_vm7 = vcmp.gt.f32.partialorder %v1413_v21, 0.0  ;;  %v1455_v25 = vmul.f32 0.01, %v1413_v21 }
 0x3c1   : > { %vm1440_vm8 = vcmp.gt.f32.partialorder %v1415_v24, 0.0  ;;  %v1456_v28 = vmul.f32 0.01, %v1415_v24  ;;  %v1418_v29 = vpop.f32.mrb[28].mxu0 }
 0x3c2   : > { %v1471_v32 = vsel %vm1439_vm7, %v1413_v21, %v1455_v25  ;;  %v1419_v33 = vadd.f32 %v1418_v29, %v1309_v26  ;;  %v1420_v34 = vpop.f32.mrb[29].mxu0 }
 0x3c3   : > { %v1939_v35 = vpack.c.bf16 %v1471_v32, %v1469_v31  ;;  %v1421_v36 = vadd.f32 %v1420_v34, %v1309_v26  ;;  %v1472_v38 = vsel %vm1440_vm8, %v1415_v24, %v1456_v28  ;;  %v1686_v3 = vpop.permute.xlu1 %1685  ;;  %v1690_v25 = vpop.permute.xlu0 %1689 }
 0x3c4   : > { %vm1441_vm11 = vcmp.gt.f32.partialorder %v1419_v33, 0.0  ;;  %v1457_v39 = vmul.f32 0.01, %v1419_v33  ;;  %v1937_v40 = vpack.c.bf16 %v1472_v38, %v1470_v37 }
 0x3c5   : > { %vm1442_vm12 = vcmp.gt.f32.partialorder %v1421_v36, 0.0  ;;  %v1458_v41 = vmul.f32 0.01, %v1421_v36 }
 0x3c6   : > { %v1473_v43 = vsel %vm1441_vm11, %v1419_v33, %v1457_v39  ;;  %1938 = vmatprep.subr.bf16.mxu0 %v1937_v40 }
 0x3c7   : > { %v1943_v44 = vpack.c.bf16 %v1475_v42, %v1473_v43  ;;  %1940 = vmatpush1.bf16.msra.mxu0 %v1939_v35  ;;  %v1474_v45 = vsel %vm1442_vm12, %v1421_v36, %v1458_v41  ;;  %v1647_v26 = vpop.permute.xlu1 %1646 }
 0x3c8   : > { %v1941_v4 = vpack.c.bf16 %v1476_v46, %v1474_v45 }
 0x3ca   : > { %1942 = vmatprep.subr.bf16.mxu0 %v1941_v4 }
 0x3cb   : > { %1944 = vmatpush1.bf16.msra.mxu0 %v1943_v44 }
 0x3ce   : > { %1862 = vmatmul.mubr.msk.f32.vlgmr.msra.gmra.mrb[30].mxu0 %vm954_vm9, %v1477_v47  ;;  %v1694_v47 = vpop.permute.xlu0 %1693 }
 0x3cf   : > { %1587 = vmatprep.mubr.f32.mxu0 %v2087_v18 }
 0x3d2   : > { %1863 = vmatmul.mubr.msk.f32.gmra.mrb[32].mxu0 %vm954_vm9, %v1478_v48 }
 0x3d3   : > { %1593 = vmatprep.mubr.f32.mxu0 %v2087_v18 }
 0x3d6   : > { %1864 = vmatmul.mubr.msk.f32.gmra.mrb[34].mxu0 %vm954_vm9, %v1479_v49  ;;  %v1652_v49 = vpop.permute.xlu1 %1651 }
 0x3d7   : > { %1599 = vmatprep.mubr.f32.mxu0 %v2087_v18 }
 0x3da   : > { %1865 = vmatmul.mubr.msk.f32.gmra.mrb[36].mxu0 %vm954_vm9, %v1480_v50 }
 0x4a1   : > { %v1583_v56 = vpop.f32.mrb[30].mxu0 }
 0x4a2   : > { %v1584_v58 = vadd.f32 %v1583_v56, %v1488_v51  ;;  %v1585_v59 = vpop.f32.mrb[31].mxu0 }
 0x4a3   : > { %v1586_v60 = vadd.f32 %v1585_v59, %v1488_v51 }
 0x4a4   : > { %v1614_v61 = vmul.f32 0.01, %v1584_v58  ;;  %vm1606_vm13 = vcmp.gt.f32.partialorder %v1584_v58, 0.0 }
 0x4a5   : > { %v1615_v62 = vmul.f32 0.01, %v1586_v60  ;;  %v1589_v18 = vpop.f32.mrb[32].mxu0  ;;  %vm1607_vm14 = vcmp.gt.f32.partialorder %v1586_v60, 0.0 }
 0x4a6   : > { %v1590_v0 = vadd.f32 %v1589_v18, %v1493_v52  ;;  %v1622_v1 = vsel %vm1606_vm13, %v1584_v58, %v1614_v61  ;;  %v1591_v2 = vpop.f32.mrb[33].mxu0 }
 0x4a7   : > { %v1623_v5 = vsel %vm1607_vm14, %v1586_v60, %v1615_v62  ;;  %v1592_v6 = vadd.f32 %v1591_v2, %v1493_v52  ;;  %v1654_v8 = vmul.f32 %v1637_v55, %v1622_v1  ;;  %v1696_v9 = vmul.f32 %v1682_v63, %v1622_v1 }
 0x4a8   : > { %v1616_v7 = vmul.f32 0.01, %v1590_v0  ;;  %vm1608_vm9 = vcmp.gt.f32.partialorder %v1590_v0, 0.0  ;;  %v1655_v12 = vmul.f32 %v1637_v55, %v1623_v5  ;;  %v1697_v13 = vmul.f32 %v1682_v63, %v1623_v5 }
 0x4a9   : > { %v1617_v10 = vmul.f32 0.01, %v1592_v6  ;;  %v1595_v11 = vpop.f32.mrb[34].mxu0  ;;  %vm1609_vm15 = vcmp.gt.f32.partialorder %v1592_v6, 0.0 }
 0x4aa   : > { %v1596_v14 = vadd.f32 %v1595_v11, %v1498_v53  ;;  %v1624_v15 = vsel %vm1608_vm9, %v1590_v0, %v1616_v7  ;;  %v1597_v16 = vpop.f32.mrb[35].mxu0 }
 0x4ab   : > { %v1625_v17 = vsel %vm1609_vm15, %v1592_v6, %v1617_v10  ;;  %v1656_v19 = vmul.f32 %v1642_v57, %v1624_v15  ;;  %v1698_v20 = vmul.f32 %v1686_v3, %v1624_v15  ;;  %v1598_v21 = vadd.f32 %v1597_v16, %v1498_v53 }
 0x4ac   : > { %v1618_v22 = vmul.f32 0.01, %v1596_v14  ;;  %v1657_v23 = vmul.f32 %v1642_v57, %v1625_v17  ;;  %v1699_v24 = vmul.f32 %v1686_v3, %v1625_v17  ;;  %vm1610_vm0 = vcmp.gt.f32.partialorder %v1596_v14, 0.0 }
 0x4ad   : > { %v1704_v27 = vadd.f32 %v1698_v20, %v1696_v9  ;;  %v1619_v28 = vmul.f32 0.01, %v1598_v21  ;;  %v1601_v29 = vpop.f32.mrb[36].mxu0  ;;  %vm1611_vm1 = vcmp.gt.f32.partialorder %v1598_v21, 0.0  ;;  %v1662_v30 = vadd.f32 %v1656_v19, %v1654_v8  ;;  %v1729_v20 = vpop.permute.xlu1 %1728 }
 0x4ae   : > { %v1713_v31 = vadd.f32 %v1699_v24, %v1697_v13  ;;  %v1602_v32 = vadd.f32 %v1601_v29, %v1503_v54  ;;  %v1626_v33 = vsel %vm1610_vm0, %v1596_v14, %v1618_v22  ;;  %v1671_v34 = vadd.f32 %v1657_v23, %v1655_v12  ;;  %v1603_v35 = vpop.f32.mrb[37].mxu0 }
 0x4af   : > { %v1627_v36 = vsel %vm1611_vm1, %v1598_v21, %v1619_v28  ;;  %v1700_v37 = vmul.f32 %v1690_v25, %v1626_v33  ;;  %v1658_v38 = vmul.f32 %v1647_v26, %v1626_v33  ;;  %v1604_v39 = vadd.f32 %v1603_v35, %v1503_v54 }
 0x4b0   : > { %v1620_v40 = vmul.f32 0.01, %v1602_v32  ;;  %v1701_v41 = vmul.f32 %v1690_v25, %v1627_v36  ;;  %v1659_v42 = vmul.f32 %v1647_v26, %v1627_v36  ;;  %vm1612_vm2 = vcmp.gt.f32.partialorder %v1602_v32, 0.0 }
 0x4b1   : > { %v1705_v43 = vadd.f32 %v1704_v27, %v1700_v37  ;;  %v1663_v44 = vadd.f32 %v1662_v30, %v1658_v38  ;;  %v1621_v45 = vmul.f32 0.01, %v1604_v39  ;;  %vm1613_vm3 = vcmp.gt.f32.partialorder %v1604_v39, 0.0 }
 0x4b2   : > { %v1714_v46 = vadd.f32 %v1713_v31, %v1701_v41  ;;  %v1672_v4 = vadd.f32 %v1671_v34, %v1659_v42  ;;  %v1628_v48 = vsel %vm1612_vm2, %v1602_v32, %v1620_v40 }
 0x4b3   : > { %v1629_v50 = vsel %vm1613_vm3, %v1604_v39, %v1621_v45  ;;  %v1702_v51 = vmul.f32 %v1694_v47, %v1628_v48  ;;  %v1660_v52 = vmul.f32 %v1652_v49, %v1628_v48 }
 0x4b4   : > { %v1703_v53 = vmul.f32 %v1694_v47, %v1629_v50  ;;  %v1661_v55 = vmul.f32 %v1652_v49, %v1629_v50 }
 0x4b5   : > { %v1706_v56 = vadd.f32 %v1705_v43, %v1702_v51  ;;  %v1664_v54 = vadd.f32 %v1663_v44, %v1660_v52 }
 0x4b6   : > { %v1715_v57 = vadd.f32 %v1714_v46, %v1703_v53  ;;  %v1673_v58 = vadd.f32 %v1672_v4, %v1661_v55 }
 0x4b7   : > { %v1707_v59 = vrot.slane %v1706_v56, 4  ;;  %v1665_v60 = vrot.slane %v1664_v54, 4 }
 0x4b8   : > { %v1716_v61 = vrot.slane %v1715_v57, 4  ;;  %v1674_v62 = vrot.slane %v1673_v58, 4 }
 0x4b9   : > { %v1708_v18 = vadd.f32 %v1707_v59, %v1706_v56  ;;  %v1666_v63 = vadd.f32 %v1665_v60, %v1664_v54 }
 0x4ba   : > { %v1717_v0 = vadd.f32 %v1716_v61, %v1715_v57  ;;  %v1675_v1 = vadd.f32 %v1674_v62, %v1673_v58 }
 0x4bb   : > { %v1709_v2 = vrot.slane %v1708_v18, 2  ;;  %v1667_v3 = vrot.slane %v1666_v63, 2 }
 0x4bc   : > { %v1718_v5 = vrot.slane %v1717_v0, 2  ;;  %v1676_v6 = vrot.slane %v1675_v1, 2 }
 0x4bd   : > { %v1710_v7 = vadd.f32 %v1709_v2, %v1708_v18  ;;  %v1668_v8 = vadd.f32 %v1667_v3, %v1666_v63 }
 0x4be   : > { %v1719_v9 = vadd.f32 %v1718_v5, %v1717_v0  ;;  %v1677_v10 = vadd.f32 %v1676_v6, %v1675_v1 }
 0x4bf   : > { %v1669_v11 = vrot.slane %v1668_v8, 1  ;;  %v1711_v12 = vrot.slane %v1710_v7, 1 }
 0x4c0   : > { %v1678_v13 = vrot.slane %v1677_v10, 1  ;;  %v1720_v14 = vrot.slane %v1719_v9, 1 }
 0x4c1   : > { %v1670_v15 = vadd.f32 %v1669_v11, %v1668_v8  ;;  %v1712_v16 = vadd.f32 %v1711_v12, %v1710_v7 }
 0x4c2   : > { %v1679_v17 = vadd.f32 %v1678_v13, %v1677_v10  ;;  %v1721_v19 = vadd.f32 %v1720_v14, %v1719_v9 }
 0x4c3   : > { %v1723_v21 = vsel %vm1722_vm4, %v1670_v15, %v1712_v16 }
 0x4c4   : > { %v1724_v22 = vsel %vm1722_vm4, %v1679_v17, %v1721_v19  ;;  %v1731_v23 = vadd.f32 %v1729_v20, %v1723_v21 }
 0x4c5   : > { %v1732_v24 = vadd.f32 %v1729_v20, %v1724_v22 }
 0x4c6   : > { %v1733_v25 = vsub.f32 0.0, %v1731_v23 }
 0x4c7   : > { %v1734_v26 = vsub.f32 0.0, %v1732_v24 }
 0x4c8   : > { %v1735_v27 = vmul.f32 1.442695, %v1733_v25 }
 0x4c9   : > { %v1737_v28 = vmul.f32 1.442695, %v1734_v26 }
 0x4ca   : > { %2013 = vpow2.f32 %v1735_v27 }
 0x4cb   : > { %2015 = vpow2.f32 %v1737_v28 }
 0x4d4   : > { %v2014_v29 = vpop.eup %2013 }
 0x4d5   : > { %v2016_v30 = vpop.eup %2015  ;;  %v1739_v31 = vadd.f32 1.0, %v2014_v29 }
 0x4d6   : > { %v1740_v32 = vadd.f32 1.0, %v2016_v30 }
 0x4d7   : > { %2017 = vrcp.f32 %v1739_v31 }
 0x4d8   : > { %2019 = vrcp.f32 %v1740_v32 }
 0x4e1   : > { %v2018_v33 = vpop.eup %2017 }
 0x4e2   : > { %v2020_v34 = vpop.eup %2019 }
 0x4e3   : > { %v1747_v35 = vcombine.low %v2018_v33, %v2020_v34 }
 0x4e5   : > { %1866 = vst.sshfl [vmem:[%s434_s21] sm:$0x33 pattern:$0x76325410] %v1747_v35 }
 0x4e6   : > { %2034 = shalt.err (!%p2031_p3)
}
 0x4e7   : > { %s2035_s16 = scalar_lea.hbm %s2546_s24, 64  ;;  %s2039_s17 = scalar_lea.hbm %s2601_s13, 128 }
 0x4e8   : > { %p2036_p4 = scmp.ne.s32.totalorder %s2546_s24, %s2035_s16  ;;  %p2040_p9 = scmp.lt.u32.totalorder %s2546_s24, %s2601_s13 }
 0x4e9   : > { %p2041_p10 = scmp.lt.u32.totalorder %s2039_s17, %s2035_s16  ;;  %p2043_p12 = scmp.lt.u32.totalorder %s2035_s16, %s2546_s24 }
 0x4ea   : > { %p2037_p7 = pnand %p2036_p4, %p2197_p5 }
 0x4eb   : > { %p2042_p11 = por %p2041_p10, %p2040_p9 }
 0x4ec   : > { %p2038_p8 = pneg %p2037_p7 }
 0x4ed   : > { %p2044_p13 = por %p2043_p12, %p2042_p11 }
 0x4ef   : > { %p2045_p0 = pnand %p2044_p13, %p2038_p8 }
 0x4f1   : > { %2048 = shalt.err (!%p2045_p0)
}
 0x4f2   : > { %1961 = dma.vmem_to_hbm [thread:$0]  (%p2197_p5), %s2548_s22, 64, %s2546_s24, %s1758_s30  }
 0x4f3 PF: > { %p1967_p1 = scmp.ge.s32.totalorder %s2083_s28, 2  ;;  %s1784_s0 = sand.u32 1, %s2071_s25  }
 0x4f4   : > { %s1785_s15 = scalar_lea.sflag [#allocation3], %s1784_s0 }
 0x4f5   : > { %p1964_p2 = pnand %p1967_p1, %p2201_p6 }
 0x4f7   : > { %2066 = dma.done.wait (!%p1964_p2), %s1785_s15, 64  }
 0x4f8   : > { %2068 = vsyncadd (!%p1964_p2), %s1785_s15, 4294967232  ;;  %s2609_s1 = sld [smem:[#allocation5_spill]]  ;;  %p23_p3 = scmp.ge.s32.totalorder %s2184_s14, 4  }
 0x4f9   : > { %s2610_s25 = smov %s2075_s26  ;;  %s2611_s26 = smov %s2079_s27 }
 0x4fa   : > { %s2613_s28 = smov %s2184_s14  ;;  %25 = sbr.rel (!%p23_p3) target bundleno = 6 (0x6), region = 107 }
 0x4fe   : > { %s2612_s27 = smov %s2609_s1 }
 0x501   :  { %1790 = vsyncpa [#allocation3], 1 }
 0x502   :  { %1792 = vsyncpa [#allocation3 + $0x1], 1 }

</bundles_post_ra>
